<compile_context>
chip_gen: v6e
topology: v6e:2x2x1
jax: 0.10.0
libtpu: 0.0.40
codegen_flags: <defaults>
</compile_context>

<pallas_src>
import jax
import jax.numpy as jnp
import numpy as np
from jax import lax
from jax.experimental import pallas as pl
from jax.experimental.pallas import tpu as pltpu


def _round_up(v, m):
    return (v + m - 1) // m * m


def _bilstm_fc_kernel(x2_ref,    # (T*Bp, 2I)   time-aligned input pairs [x_t | x_{T-1-t}]
                      wih_ref,   # (2I, 8Hp)    zero-padded combined W_ih^T
                      whh_ref,   # (2Hp, 8Hp)   block-diagonal W_hh^T
                      b_ref,     # (1, 8Hp)     folded b_ih + b_hh
                      wfc_ref,   # (2Hp, O)     fc W^T, rows [h_fwd | h_bwd]
                      bfc_ref,   # (1, O)       fc bias
                      out_ref,   # (Bp, O)
                      gx_ref):   # VMEM scratch (T*Bp, 8Hp): time-aligned gate projections
    TB = x2_ref.shape[0]
    Bp = out_ref.shape[0]
    T = TB // Bp
    Hp = whh_ref.shape[0] // 2

    # ---- stage 1: one batched input projection for all timesteps & both directions ----
    # Backward-direction columns already see x[T-1-t] (wrapper builds the pair), so gx
    # is time-aligned for the recurrence.  Column order: [i_f,i_b,f_f,f_b,o_f,o_b,g_f,g_b].
    gx_ref[...] = (jnp.dot(x2_ref[...], wih_ref[...],
                           preferred_element_type=jnp.float32) + b_ref[...])
    # TODO(synk): for long T, store gx in bfloat16 (keep h/c/gate math in f32) and/or
    # stream x/gx over a time-chunk grid axis with h/c persisted in scratch, so the
    # footprint is O(chunk) instead of O(T) (critical on v7x's 64 MiB VMEM).

    # ---- stage 2: fused fwd+bwd recurrence, state carried in registers ----
    w_hh = whh_ref[...]
    # TODO(synk): hold w_hh in MXU staging regs across the loop via
    # pltpu.matmul_push_rhs / matmul_acc_lhs / matmul_pop (RHS is loop-invariant).
    # TODO(synk): on v7x, run the two directions on the two TensorCores instead of the
    # fused block-diagonal matmul (serial recurrence is the wall-clock bottleneck there).

    def step(t, carry):
        h_all, c_all = carry                               # (Bp, 2Hp), layout [fwd | bwd]
        row = pl.multiple_of(t * Bp, Bp)
        gx_t = gx_ref[pl.ds(row, Bp), :]                   # single aligned load, no select
        gates = gx_t + jnp.dot(h_all, w_hh, preferred_element_type=jnp.float32)
        sg = jax.nn.sigmoid(gates[:, :6 * Hp])             # [i_f,i_b,f_f,f_b,o_f,o_b]
        g = jnp.tanh(gates[:, 6 * Hp:])                    # [g_f, g_b]
        c_new = sg[:, 2 * Hp:4 * Hp] * c_all + sg[:, :2 * Hp] * g
        h_new = sg[:, 4 * Hp:] * jnp.tanh(c_new)
        return h_new, c_new

    zeros = jnp.zeros((Bp, 2 * Hp), jnp.float32)
    unroll = T if T <= 16 else 8                           # partial unroll for long T
    h_fin, _ = lax.fori_loop(0, T, step, (zeros, zeros), unroll=unroll)

    # ---- stage 3: fc epilogue (dropout is identity at inference, so elided) ----
    out = jnp.dot(h_fin, wfc_ref[...], preferred_element_type=jnp.float32) + bfc_ref[...]
    out_ref[...] = out.astype(out_ref.dtype)


def one_layer_lstm_forward(x, lengths, params):
    """x: (batch, seq, input) float32.  lengths is ignored (as in the reference)."""
    del lengths  # the PyTorch forward never packs the sequence
    B, T, I = x.shape
    H = params["w_hh_f"].shape[1]
    O = params["w_fc"].shape[0]

    # Alignment padding: 2*Hp multiple of 128 (lane-aligned gate slices, MXU K-fill),
    # Bp multiple of 8 (sublane-aligned rows, view-only flatten).
    Hp = _round_up(H, 64)
    Bp = _round_up(B, 8)
    dH = Hp - H

    def split4(w):  # PyTorch gate-row order: i, f, g, o (each H rows / entries)
        return w[0:H], w[H:2 * H], w[2 * H:3 * H], w[3 * H:4 * H]

    pad_rows = lambda w: jnp.pad(w, ((0, dH), (0, 0)))     # (H, X)  -> (Hp, X)
    pad_sq = lambda w: jnp.pad(w, ((0, dH), (0, dH)))      # (H, H)  -> (Hp, Hp)
    pad_vec = lambda v: jnp.pad(v, (0, dH))                # (H,)    -> (Hp,)

    # Combined time-aligned input weights (2I, 8Hp).
    # Rows 0:I act on x[t] (forward columns), rows I:2I act on x[T-1-t] (backward cols).
    # Column blocks: [i_f, i_b, f_f, f_b, o_f, o_b, g_f, g_b], each Hp wide.
    i_f, f_f, g_f, o_f = map(pad_rows, split4(params["w_ih_f"]))
    i_b, f_b, g_b, o_b = map(pad_rows, split4(params["w_ih_b"]))
    Zc = jnp.zeros((I, Hp), jnp.float32)
    top = jnp.concatenate([i_f.T, Zc, f_f.T, Zc, o_f.T, Zc, g_f.T, Zc], axis=1)
    bot = jnp.concatenate([Zc, i_b.T, Zc, f_b.T, Zc, o_b.T, Zc, g_b.T], axis=1)
    w_ih_comb = jnp.concatenate([top, bot], axis=0)                           # (2I, 8Hp)

    # Folded biases (padded lanes get zero bias -> padded state stays exactly 0).
    bi_f, bf_f, bg_f, bo_f = map(pad_vec, split4(params["b_ih_f"] + params["b_hh_f"]))
    bi_b, bf_b, bg_b, bo_b = map(pad_vec, split4(params["b_ih_b"] + params["b_hh_b"]))
    b_comb = jnp.concatenate([bi_f, bi_b, bf_f, bf_b,
                              bo_f, bo_b, bg_f, bg_b]).reshape(1, -1)         # (1, 8Hp)

    # Block-diagonal recurrent weights: rows 0:Hp act on h_fwd, rows Hp:2Hp on h_bwd.
    hi_f, hf_f, hg_f, ho_f = map(pad_sq, split4(params["w_hh_f"]))
    hi_b, hf_b, hg_b, ho_b = map(pad_sq, split4(params["w_hh_b"]))
    Z = jnp.zeros((Hp, Hp), jnp.float32)
    blk_f = lambda w: jnp.concatenate([w.T, Z], axis=0)
    blk_b = lambda w: jnp.concatenate([Z, w.T], axis=0)
    w_hh_comb = jnp.concatenate(
        [blk_f(hi_f), blk_b(hi_b), blk_f(hf_f), blk_b(hf_b),
         blk_f(ho_f), blk_b(ho_b), blk_f(hg_f), blk_b(hg_b)], axis=1)         # (2Hp, 8Hp)

    # fc: (2Hp, O), rows ordered [h_fwd(Hp) | h_bwd(Hp)]; padded rows are zero.
    wfc = params["w_fc"]
    wfc_t = jnp.concatenate([pad_rows(wfc[:, :H].T), pad_rows(wfc[:, H:].T)], axis=0)
    bfc = params["b_fc"].reshape(1, -1)

    # Time-aligned input pairs, batch padded, flattened to one big matmul LHS.
    x_tm = jnp.transpose(x, (1, 0, 2))                       # (T, B, I)
    x_pair = jnp.concatenate([x_tm, x_tm[::-1]], axis=-1)    # (T, B, 2I): [x_t | x_{T-1-t}]
    x_pair = jnp.pad(x_pair, ((0, 0), (0, Bp - B), (0, 0)))  # (T, Bp, 2I)
    x2 = x_pair.reshape(T * Bp, 2 * I)                       # pure view (Bp % 8 == 0)

    # Explicit VMEM budget (default scoped limit is 16/32 MiB — far below physical).
    nbytes = 4 * (x2.size + T * Bp * 8 * Hp + w_ih_comb.size + w_hh_comb.size
                  + b_comb.size + wfc_t.size + bfc.size + Bp * O)
    vmem_limit = int(min(max(2 * nbytes + (4 << 20), 16 << 20), 64 << 20))

    vmem = pl.BlockSpec(memory_space=pltpu.MemorySpace.VMEM)
    out = pl.pallas_call(
        _bilstm_fc_kernel,
        out_shape=jax.ShapeDtypeStruct((Bp, O), jnp.float32),
        in_specs=[vmem] * 6,
        out_specs=vmem,
        scratch_shapes=[pltpu.VMEM((T * Bp, 8 * Hp), jnp.float32)],
        compiler_params=pltpu.CompilerParams(vmem_limit_bytes=vmem_limit),
    )(x2, w_ih_comb, w_hh_comb, b_comb, wfc_t, bfc)

    return jnp.squeeze(out[:B])  # drop batch padding; matches output.squeeze()


def init_params(key, input_size, hidden_size, output_size):
    """Deterministic init mirroring nn.LSTM / nn.Linear shapes (U(-1/sqrt(H), 1/sqrt(H)))."""
    bound = 1.0 / (hidden_size ** 0.5)
    keys = jax.random.split(key, 10)

    def u(k, shape):
        return jax.random.uniform(k, shape, jnp.float32, -bound, bound)

    return {
        # forward direction
        "w_ih_f": u(keys[0], (4 * hidden_size, input_size)),
        "w_hh_f": u(keys[1], (4 * hidden_size, hidden_size)),
        "b_ih_f": u(keys[2], (4 * hidden_size,)),
        "b_hh_f": u(keys[3], (4 * hidden_size,)),
        # reverse direction
        "w_ih_b": u(keys[4], (4 * hidden_size, input_size)),
        "w_hh_b": u(keys[5], (4 * hidden_size, hidden_size)),
        "b_ih_b": u(keys[6], (4 * hidden_size,)),
        "b_hh_b": u(keys[7], (4 * hidden_size,)),
        # fc: Linear(2*hidden, output)
        "w_fc": u(keys[8], (output_size, 2 * hidden_size)),
        "b_fc": u(keys[9], (output_size,)),
    }


def _reference_forward(x, params):
    """Pure-JAX (XLA) replica of the PyTorch forward, for a correctness check."""
    B, T, _ = x.shape
    H = params["w_hh_f"].shape[1]

    def run(x_seq, wih, whh, bih, bhh):
        h = jnp.zeros((B, H), jnp.float32)
        c = jnp.zeros((B, H), jnp.float32)
        for t in range(x_seq.shape[1]):
            xt = x_seq[:, t, :]
            gates = xt @ wih.T + h @ whh.T + bih + bhh
            i = jax.nn.sigmoid(gates[:, 0:H])
            f = jax.nn.sigmoid(gates[:, H:2 * H])
            g = jnp.tanh(gates[:, 2 * H:3 * H])
            o = jax.nn.sigmoid(gates[:, 3 * H:4 * H])
            c = f * c + i * g
            h = o * jnp.tanh(c)
        return h

    h_f = run(x, params["w_ih_f"], params["w_hh_f"], params["b_ih_f"], params["b_hh_f"])
    h_b = run(x[:, ::-1, :], params["w_ih_b"], params["w_hh_b"],
              params["b_ih_b"], params["b_hh_b"])
    hcat = jnp.concatenate([h_f, h_b], axis=-1)
    return jnp.squeeze(hcat @ params["w_fc"].T + params["b_fc"])


if __name__ == "__main__":
    batch, seq, input_size, hidden_size, output_size = 2, 8, 16, 32, 8

    key = jax.random.PRNGKey(0)
    k_x, k_p = jax.random.split(key)
    x = jax.random.normal(k_x, (batch, seq, input_size), jnp.float32)
    lengths = jnp.full((batch,), seq, jnp.int32)
    params = init_params(k_p, input_size, hidden_size, output_size)

    out = one_layer_lstm_forward(x, lengths, params)
    out = jax.block_until_ready(out)
    assert out.shape == (batch, output_size), out.shape

    ref = jax.block_until_ready(_reference_forward(x, params))
    np.testing.assert_allclose(np.asarray(out), np.asarray(ref), atol=2e-3, rtol=2e-3)

    print("KERNEL_OK")
</pallas_src>

<mosaic_0001>
module attributes {stable_mosaic.version = 11 : i64} {
  func.func @_bilstm_fc_kernel(%arg0: memref<64x32xf32, #tpu.memory_space<vmem>>, %arg1: memref<32x512xf32, #tpu.memory_space<vmem>>, %arg2: memref<128x512xf32, #tpu.memory_space<vmem>>, %arg3: memref<1x512xf32, #tpu.memory_space<vmem>>, %arg4: memref<128x8xf32, #tpu.memory_space<vmem>>, %arg5: memref<1x8xf32, #tpu.memory_space<vmem>>, %arg6: memref<8x8xf32, #tpu.memory_space<vmem>>, %arg7: memref<64x512xf32, #tpu.memory_space<vmem>>) attributes {dimension_semantics = [], scalar_prefetch = 0 : i64, scratch_operands = 1 : i64, tpu.core_type = #tpu.core_type<tc>} {
    %c0 = arith.constant 0 : index
    %c0_0 = arith.constant 0 : index
    %0 = vector.load %arg0[%c0, %c0_0] : memref<64x32xf32, #tpu.memory_space<vmem>>, vector<64x32xf32>
    %c0_1 = arith.constant 0 : index
    %c0_2 = arith.constant 0 : index
    %1 = vector.load %arg1[%c0_1, %c0_2] : memref<32x512xf32, #tpu.memory_space<vmem>>, vector<32x512xf32>
    %cst = arith.constant dense<0.000000e+00> : vector<64x512xf32>
    %2 = tpu.matmul %0, %1, %cst {dimension_numbers = #tpu.dot_dimension_numbers<[1], [0], [0], [1], [0, 0, 1, 1], [], []>} : vector<64x32xf32>, vector<32x512xf32>, vector<64x512xf32> -> vector<64x512xf32>
    %c0_3 = arith.constant 0 : index
    %c0_4 = arith.constant 0 : index
    %3 = vector.load %arg3[%c0_3, %c0_4] : memref<1x512xf32, #tpu.memory_space<vmem>>, vector<1x512xf32>
    %4 = vector.broadcast %3 : vector<1x512xf32> to vector<64x512xf32>
    %5 = arith.addf %2, %4 : vector<64x512xf32>
    %c0_5 = arith.constant 0 : index
    %c0_6 = arith.constant 0 : index
    %6 = vector.load %arg7[%c0_5, %c0_6] : memref<64x512xf32, #tpu.memory_space<vmem>>, vector<64x512xf32>
    tpu.vector_store %arg7[%c0_5, %c0_6], %5 {strides = array<i32>} : memref<64x512xf32, #tpu.memory_space<vmem>>, vector<64x512xf32>,
    %c0_7 = arith.constant 0 : index
    %c0_8 = arith.constant 0 : index
    %7 = vector.load %arg2[%c0_7, %c0_8] : memref<128x512xf32, #tpu.memory_space<vmem>>, vector<128x512xf32>
    %cst_9 = arith.constant 0.000000e+00 : f32
    %8 = vector.broadcast %cst_9 : f32 to vector<8x128xf32>
    %c0_i32 = arith.constant 0 : i32
    %c8_i32 = arith.constant 8 : i32
    %9 = arith.muli %c0_i32, %c8_i32 : i32
    %10 = tpu.assume_multiple %9, 8 : i32
    %11 = arith.index_cast %10 : i32 to index
    %c0_10 = arith.constant 0 : index
    %12 = vector.load %arg7[%11, %c0_10] : memref<64x512xf32, #tpu.memory_space<vmem>>, vector<8x512xf32>
    %cst_11 = arith.constant dense<0.000000e+00> : vector<8x512xf32>
    %13 = tpu.matmul %8, %7, %cst_11 {dimension_numbers = #tpu.dot_dimension_numbers<[1], [0], [0], [1], [0, 0, 1, 1], [], []>} : vector<8x128xf32>, vector<128x512xf32>, vector<8x512xf32> -> vector<8x512xf32>
    %14 = arith.addf %12, %13 : vector<8x512xf32>
    %15 = vector.extract_strided_slice %14 {offsets = [0, 0], sizes = [8, 384], strides = [1, 1]} : vector<8x512xf32> to vector<8x384xf32>
    %16 = arith.negf %15 : vector<8x384xf32>
    %17 = math.exp %16 : vector<8x384xf32>
    %cst_12 = arith.constant 1.000000e+00 : f32
    %18 = vector.broadcast %cst_12 : f32 to vector<8x384xf32>
    %19 = arith.addf %18, %17 : vector<8x384xf32>
    %20 = arith.divf %18, %19 : vector<8x384xf32>
    %21 = vector.extract_strided_slice %14 {offsets = [0, 384], sizes = [8, 128], strides = [1, 1]} : vector<8x512xf32> to vector<8x128xf32>
    %22 = math.tanh %21 : vector<8x128xf32>
    %23 = vector.extract_strided_slice %20 {offsets = [0, 128], sizes = [8, 128], strides = [1, 1]} : vector<8x384xf32> to vector<8x128xf32>
    %24 = arith.mulf %23, %8 : vector<8x128xf32>
    %25 = vector.extract_strided_slice %20 {offsets = [0, 0], sizes = [8, 128], strides = [1, 1]} : vector<8x384xf32> to vector<8x128xf32>
    %26 = arith.mulf %25, %22 : vector<8x128xf32>
    %27 = arith.addf %24, %26 : vector<8x128xf32>
    %28 = vector.extract_strided_slice %20 {offsets = [0, 256], sizes = [8, 128], strides = [1, 1]} : vector<8x384xf32> to vector<8x128xf32>
    %29 = math.tanh %27 : vector<8x128xf32>
    %30 = arith.mulf %28, %29 : vector<8x128xf32>
    %c1_i32 = arith.constant 1 : i32
    %c8_i32_13 = arith.constant 8 : i32
    %31 = arith.muli %c1_i32, %c8_i32_13 : i32
    %32 = tpu.assume_multiple %31, 8 : i32
    %33 = arith.index_cast %32 : i32 to index
    %c0_14 = arith.constant 0 : index
    %34 = vector.load %arg7[%33, %c0_14] : memref<64x512xf32, #tpu.memory_space<vmem>>, vector<8x512xf32>
    %cst_15 = arith.constant dense<0.000000e+00> : vector<8x512xf32>
    %35 = tpu.matmul %30, %7, %cst_15 {dimension_numbers = #tpu.dot_dimension_numbers<[1], [0], [0], [1], [0, 0, 1, 1], [], []>} : vector<8x128xf32>, vector<128x512xf32>, vector<8x512xf32> -> vector<8x512xf32>
    %36 = arith.addf %34, %35 : vector<8x512xf32>
    %37 = vector.extract_strided_slice %36 {offsets = [0, 0], sizes = [8, 384], strides = [1, 1]} : vector<8x512xf32> to vector<8x384xf32>
    %38 = arith.negf %37 : vector<8x384xf32>
    %39 = math.exp %38 : vector<8x384xf32>
    %cst_16 = arith.constant 1.000000e+00 : f32
    %40 = vector.broadcast %cst_16 : f32 to vector<8x384xf32>
    %41 = arith.addf %40, %39 : vector<8x384xf32>
    %42 = arith.divf %40, %41 : vector<8x384xf32>
    %43 = vector.extract_strided_slice %36 {offsets = [0, 384], sizes = [8, 128], strides = [1, 1]} : vector<8x512xf32> to vector<8x128xf32>
    %44 = math.tanh %43 : vector<8x128xf32>
    %45 = vector.extract_strided_slice %42 {offsets = [0, 128], sizes = [8, 128], strides = [1, 1]} : vector<8x384xf32> to vector<8x128xf32>
    %46 = arith.mulf %45, %27 : vector<8x128xf32>
    %47 = vector.extract_strided_slice %42 {offsets = [0, 0], sizes = [8, 128], strides = [1, 1]} : vector<8x384xf32> to vector<8x128xf32>
    %48 = arith.mulf %47, %44 : vector<8x128xf32>
    %49 = arith.addf %46, %48 : vector<8x128xf32>
    %50 = vector.extract_strided_slice %42 {offsets = [0, 256], sizes = [8, 128], strides = [1, 1]} : vector<8x384xf32> to vector<8x128xf32>
    %51 = math.tanh %49 : vector<8x128xf32>
    %52 = arith.mulf %50, %51 : vector<8x128xf32>
    %c2_i32 = arith.constant 2 : i32
    %c8_i32_17 = arith.constant 8 : i32
    %53 = arith.muli %c2_i32, %c8_i32_17 : i32
    %54 = tpu.assume_multiple %53, 8 : i32
    %55 = arith.index_cast %54 : i32 to index
    %c0_18 = arith.constant 0 : index
    %56 = vector.load %arg7[%55, %c0_18] : memref<64x512xf32, #tpu.memory_space<vmem>>, vector<8x512xf32>
    %cst_19 = arith.constant dense<0.000000e+00> : vector<8x512xf32>
    %57 = tpu.matmul %52, %7, %cst_19 {dimension_numbers = #tpu.dot_dimension_numbers<[1], [0], [0], [1], [0, 0, 1, 1], [], []>} : vector<8x128xf32>, vector<128x512xf32>, vector<8x512xf32> -> vector<8x512xf32>
    %58 = arith.addf %56, %57 : vector<8x512xf32>
    %59 = vector.extract_strided_slice %58 {offsets = [0, 0], sizes = [8, 384], strides = [1, 1]} : vector<8x512xf32> to vector<8x384xf32>
    %60 = arith.negf %59 : vector<8x384xf32>
    %61 = math.exp %60 : vector<8x384xf32>
    %cst_20 = arith.constant 1.000000e+00 : f32
    %62 = vector.broadcast %cst_20 : f32 to vector<8x384xf32>
    %63 = arith.addf %62, %61 : vector<8x384xf32>
    %64 = arith.divf %62, %63 : vector<8x384xf32>
    %65 = vector.extract_strided_slice %58 {offsets = [0, 384], sizes = [8, 128], strides = [1, 1]} : vector<8x512xf32> to vector<8x128xf32>
    %66 = math.tanh %65 : vector<8x128xf32>
    %67 = vector.extract_strided_slice %64 {offsets = [0, 128], sizes = [8, 128], strides = [1, 1]} : vector<8x384xf32> to vector<8x128xf32>
    %68 = arith.mulf %67, %49 : vector<8x128xf32>
    %69 = vector.extract_strided_slice %64 {offsets = [0, 0], sizes = [8, 128], strides = [1, 1]} : vector<8x384xf32> to vector<8x128xf32>
    %70 = arith.mulf %69, %66 : vector<8x128xf32>
    %71 = arith.addf %68, %70 : vector<8x128xf32>
    %72 = vector.extract_strided_slice %64 {offsets = [0, 256], sizes = [8, 128], strides = [1, 1]} : vector<8x384xf32> to vector<8x128xf32>
    %73 = math.tanh %71 : vector<8x128xf32>
    %74 = arith.mulf %72, %73 : vector<8x128xf32>
    %c3_i32 = arith.constant 3 : i32
    %c8_i32_21 = arith.constant 8 : i32
    %75 = arith.muli %c3_i32, %c8_i32_21 : i32
    %76 = tpu.assume_multiple %75, 8 : i32
    %77 = arith.index_cast %76 : i32 to index
    %c0_22 = arith.constant 0 : index
    %78 = vector.load %arg7[%77, %c0_22] : memref<64x512xf32, #tpu.memory_space<vmem>>, vector<8x512xf32>
    %cst_23 = arith.constant dense<0.000000e+00> : vector<8x512xf32>
    %79 = tpu.matmul %74, %7, %cst_23 {dimension_numbers = #tpu.dot_dimension_numbers<[1], [0], [0], [1], [0, 0, 1, 1], [], []>} : vector<8x128xf32>, vector<128x512xf32>, vector<8x512xf32> -> vector<8x512xf32>
    %80 = arith.addf %78, %79 : vector<8x512xf32>
    %81 = vector.extract_strided_slice %80 {offsets = [0, 0], sizes = [8, 384], strides = [1, 1]} : vector<8x512xf32> to vector<8x384xf32>
    %82 = arith.negf %81 : vector<8x384xf32>
    %83 = math.exp %82 : vector<8x384xf32>
    %cst_24 = arith.constant 1.000000e+00 : f32
    %84 = vector.broadcast %cst_24 : f32 to vector<8x384xf32>
    %85 = arith.addf %84, %83 : vector<8x384xf32>
    %86 = arith.divf %84, %85 : vector<8x384xf32>
    %87 = vector.extract_strided_slice %80 {offsets = [0, 384], sizes = [8, 128], strides = [1, 1]} : vector<8x512xf32> to vector<8x128xf32>
    %88 = math.tanh %87 : vector<8x128xf32>
    %89 = vector.extract_strided_slice %86 {offsets = [0, 128], sizes = [8, 128], strides = [1, 1]} : vector<8x384xf32> to vector<8x128xf32>
    %90 = arith.mulf %89, %71 : vector<8x128xf32>
    %91 = vector.extract_strided_slice %86 {offsets = [0, 0], sizes = [8, 128], strides = [1, 1]} : vector<8x384xf32> to vector<8x128xf32>
    %92 = arith.mulf %91, %88 : vector<8x128xf32>
    %93 = arith.addf %90, %92 : vector<8x128xf32>
    %94 = vector.extract_strided_slice %86 {offsets = [0, 256], sizes = [8, 128], strides = [1, 1]} : vector<8x384xf32> to vector<8x128xf32>
    %95 = math.tanh %93 : vector<8x128xf32>
    %96 = arith.mulf %94, %95 : vector<8x128xf32>
    %c4_i32 = arith.constant 4 : i32
    %c8_i32_25 = arith.constant 8 : i32
    %97 = arith.muli %c4_i32, %c8_i32_25 : i32
    %98 = tpu.assume_multiple %97, 8 : i32
    %99 = arith.index_cast %98 : i32 to index
    %c0_26 = arith.constant 0 : index
    %100 = vector.load %arg7[%99, %c0_26] : memref<64x512xf32, #tpu.memory_space<vmem>>, vector<8x512xf32>
    %cst_27 = arith.constant dense<0.000000e+00> : vector<8x512xf32>
    %101 = tpu.matmul %96, %7, %cst_27 {dimension_numbers = #tpu.dot_dimension_numbers<[1], [0], [0], [1], [0, 0, 1, 1], [], []>} : vector<8x128xf32>, vector<128x512xf32>, vector<8x512xf32> -> vector<8x512xf32>
    %102 = arith.addf %100, %101 : vector<8x512xf32>
    %103 = vector.extract_strided_slice %102 {offsets = [0, 0], sizes = [8, 384], strides = [1, 1]} : vector<8x512xf32> to vector<8x384xf32>
    %104 = arith.negf %103 : vector<8x384xf32>
    %105 = math.exp %104 : vector<8x384xf32>
    %cst_28 = arith.constant 1.000000e+00 : f32
    %106 = vector.broadcast %cst_28 : f32 to vector<8x384xf32>
    %107 = arith.addf %106, %105 : vector<8x384xf32>
    %108 = arith.divf %106, %107 : vector<8x384xf32>
    %109 = vector.extract_strided_slice %102 {offsets = [0, 384], sizes = [8, 128], strides = [1, 1]} : vector<8x512xf32> to vector<8x128xf32>
    %110 = math.tanh %109 : vector<8x128xf32>
    %111 = vector.extract_strided_slice %108 {offsets = [0, 128], sizes = [8, 128], strides = [1, 1]} : vector<8x384xf32> to vector<8x128xf32>
    %112 = arith.mulf %111, %93 : vector<8x128xf32>
    %113 = vector.extract_strided_slice %108 {offsets = [0, 0], sizes = [8, 128], strides = [1, 1]} : vector<8x384xf32> to vector<8x128xf32>
    %114 = arith.mulf %113, %110 : vector<8x128xf32>
    %115 = arith.addf %112, %114 : vector<8x128xf32>
    %116 = vector.extract_strided_slice %108 {offsets = [0, 256], sizes = [8, 128], strides = [1, 1]} : vector<8x384xf32> to vector<8x128xf32>
    %117 = math.tanh %115 : vector<8x128xf32>
    %118 = arith.mulf %116, %117 : vector<8x128xf32>
    %c5_i32 = arith.constant 5 : i32
    %c8_i32_29 = arith.constant 8 : i32
    %119 = arith.muli %c5_i32, %c8_i32_29 : i32
    %120 = tpu.assume_multiple %119, 8 : i32
    %121 = arith.index_cast %120 : i32 to index
    %c0_30 = arith.constant 0 : index
    %122 = vector.load %arg7[%121, %c0_30] : memref<64x512xf32, #tpu.memory_space<vmem>>, vector<8x512xf32>
    %cst_31 = arith.constant dense<0.000000e+00> : vector<8x512xf32>
    %123 = tpu.matmul %118, %7, %cst_31 {dimension_numbers = #tpu.dot_dimension_numbers<[1], [0], [0], [1], [0, 0, 1, 1], [], []>} : vector<8x128xf32>, vector<128x512xf32>, vector<8x512xf32> -> vector<8x512xf32>
    %124 = arith.addf %122, %123 : vector<8x512xf32>
    %125 = vector.extract_strided_slice %124 {offsets = [0, 0], sizes = [8, 384], strides = [1, 1]} : vector<8x512xf32> to vector<8x384xf32>
    %126 = arith.negf %125 : vector<8x384xf32>
    %127 = math.exp %126 : vector<8x384xf32>
    %cst_32 = arith.constant 1.000000e+00 : f32
    %128 = vector.broadcast %cst_32 : f32 to vector<8x384xf32>
    %129 = arith.addf %128, %127 : vector<8x384xf32>
    %130 = arith.divf %128, %129 : vector<8x384xf32>
    %131 = vector.extract_strided_slice %124 {offsets = [0, 384], sizes = [8, 128], strides = [1, 1]} : vector<8x512xf32> to vector<8x128xf32>
    %132 = math.tanh %131 : vector<8x128xf32>
    %133 = vector.extract_strided_slice %130 {offsets = [0, 128], sizes = [8, 128], strides = [1, 1]} : vector<8x384xf32> to vector<8x128xf32>
    %134 = arith.mulf %133, %115 : vector<8x128xf32>
    %135 = vector.extract_strided_slice %130 {offsets = [0, 0], sizes = [8, 128], strides = [1, 1]} : vector<8x384xf32> to vector<8x128xf32>
    %136 = arith.mulf %135, %132 : vector<8x128xf32>
    %137 = arith.addf %134, %136 : vector<8x128xf32>
    %138 = vector.extract_strided_slice %130 {offsets = [0, 256], sizes = [8, 128], strides = [1, 1]} : vector<8x384xf32> to vector<8x128xf32>
    %139 = math.tanh %137 : vector<8x128xf32>
    %140 = arith.mulf %138, %139 : vector<8x128xf32>
    %c6_i32 = arith.constant 6 : i32
    %c8_i32_33 = arith.constant 8 : i32
    %141 = arith.muli %c6_i32, %c8_i32_33 : i32
    %142 = tpu.assume_multiple %141, 8 : i32
    %143 = arith.index_cast %142 : i32 to index
    %c0_34 = arith.constant 0 : index
    %144 = vector.load %arg7[%143, %c0_34] : memref<64x512xf32, #tpu.memory_space<vmem>>, vector<8x512xf32>
    %cst_35 = arith.constant dense<0.000000e+00> : vector<8x512xf32>
    %145 = tpu.matmul %140, %7, %cst_35 {dimension_numbers = #tpu.dot_dimension_numbers<[1], [0], [0], [1], [0, 0, 1, 1], [], []>} : vector<8x128xf32>, vector<128x512xf32>, vector<8x512xf32> -> vector<8x512xf32>
    %146 = arith.addf %144, %145 : vector<8x512xf32>
    %147 = vector.extract_strided_slice %146 {offsets = [0, 0], sizes = [8, 384], strides = [1, 1]} : vector<8x512xf32> to vector<8x384xf32>
    %148 = arith.negf %147 : vector<8x384xf32>
    %149 = math.exp %148 : vector<8x384xf32>
    %cst_36 = arith.constant 1.000000e+00 : f32
    %150 = vector.broadcast %cst_36 : f32 to vector<8x384xf32>
    %151 = arith.addf %150, %149 : vector<8x384xf32>
    %152 = arith.divf %150, %151 : vector<8x384xf32>
    %153 = vector.extract_strided_slice %146 {offsets = [0, 384], sizes = [8, 128], strides = [1, 1]} : vector<8x512xf32> to vector<8x128xf32>
    %154 = math.tanh %153 : vector<8x128xf32>
    %155 = vector.extract_strided_slice %152 {offsets = [0, 128], sizes = [8, 128], strides = [1, 1]} : vector<8x384xf32> to vector<8x128xf32>
    %156 = arith.mulf %155, %137 : vector<8x128xf32>
    %157 = vector.extract_strided_slice %152 {offsets = [0, 0], sizes = [8, 128], strides = [1, 1]} : vector<8x384xf32> to vector<8x128xf32>
    %158 = arith.mulf %157, %154 : vector<8x128xf32>
    %159 = arith.addf %156, %158 : vector<8x128xf32>
    %160 = vector.extract_strided_slice %152 {offsets = [0, 256], sizes = [8, 128], strides = [1, 1]} : vector<8x384xf32> to vector<8x128xf32>
    %161 = math.tanh %159 : vector<8x128xf32>
    %162 = arith.mulf %160, %161 : vector<8x128xf32>
    %c7_i32 = arith.constant 7 : i32
    %c8_i32_37 = arith.constant 8 : i32
    %163 = arith.muli %c7_i32, %c8_i32_37 : i32
    %164 = tpu.assume_multiple %163, 8 : i32
    %165 = arith.index_cast %164 : i32 to index
    %c0_38 = arith.constant 0 : index
    %166 = vector.load %arg7[%165, %c0_38] : memref<64x512xf32, #tpu.memory_space<vmem>>, vector<8x512xf32>
    %cst_39 = arith.constant dense<0.000000e+00> : vector<8x512xf32>
    %167 = tpu.matmul %162, %7, %cst_39 {dimension_numbers = #tpu.dot_dimension_numbers<[1], [0], [0], [1], [0, 0, 1, 1], [], []>} : vector<8x128xf32>, vector<128x512xf32>, vector<8x512xf32> -> vector<8x512xf32>
    %168 = arith.addf %166, %167 : vector<8x512xf32>
    %169 = vector.extract_strided_slice %168 {offsets = [0, 0], sizes = [8, 384], strides = [1, 1]} : vector<8x512xf32> to vector<8x384xf32>
    %170 = arith.negf %169 : vector<8x384xf32>
    %171 = math.exp %170 : vector<8x384xf32>
    %cst_40 = arith.constant 1.000000e+00 : f32
    %172 = vector.broadcast %cst_40 : f32 to vector<8x384xf32>
    %173 = arith.addf %172, %171 : vector<8x384xf32>
    %174 = arith.divf %172, %173 : vector<8x384xf32>
    %175 = vector.extract_strided_slice %168 {offsets = [0, 384], sizes = [8, 128], strides = [1, 1]} : vector<8x512xf32> to vector<8x128xf32>
    %176 = math.tanh %175 : vector<8x128xf32>
    %177 = vector.extract_strided_slice %174 {offsets = [0, 128], sizes = [8, 128], strides = [1, 1]} : vector<8x384xf32> to vector<8x128xf32>
    %178 = arith.mulf %177, %159 : vector<8x128xf32>
    %179 = vector.extract_strided_slice %174 {offsets = [0, 0], sizes = [8, 128], strides = [1, 1]} : vector<8x384xf32> to vector<8x128xf32>
    %180 = arith.mulf %179, %176 : vector<8x128xf32>
    %181 = arith.addf %178, %180 : vector<8x128xf32>
    %182 = vector.extract_strided_slice %174 {offsets = [0, 256], sizes = [8, 128], strides = [1, 1]} : vector<8x384xf32> to vector<8x128xf32>
    %183 = math.tanh %181 : vector<8x128xf32>
    %184 = arith.mulf %182, %183 : vector<8x128xf32>
    %c8_i32_41 = arith.constant 8 : i32
    %c0_42 = arith.constant 0 : index
    %c0_43 = arith.constant 0 : index
    %185 = vector.load %arg4[%c0_42, %c0_43] : memref<128x8xf32, #tpu.memory_space<vmem>>, vector<128x8xf32>
    %cst_44 = arith.constant dense<0.000000e+00> : vector<8x8xf32>
    %186 = tpu.matmul %184, %185, %cst_44 {dimension_numbers = #tpu.dot_dimension_numbers<[1], [0], [0], [1], [0, 0, 1, 1], [], []>} : vector<8x128xf32>, vector<128x8xf32>, vector<8x8xf32> -> vector<8x8xf32>
    %c0_45 = arith.constant 0 : index
    %c0_46 = arith.constant 0 : index
    %187 = vector.load %arg5[%c0_45, %c0_46] : memref<1x8xf32, #tpu.memory_space<vmem>>, vector<1x8xf32>
    %188 = vector.broadcast %187 : vector<1x8xf32> to vector<8x8xf32>
    %189 = arith.addf %186, %188 : vector<8x8xf32>
    %c0_47 = arith.constant 0 : index
    %c0_48 = arith.constant 0 : index
    %190 = vector.load %arg6[%c0_47, %c0_48] : memref<8x8xf32, #tpu.memory_space<vmem>>, vector<8x8xf32>
    tpu.vector_store %arg6[%c0_47, %c0_48], %189 {strides = array<i32>} : memref<8x8xf32, #tpu.memory_space<vmem>>, vector<8x8xf32>,
    return
  }
}

</mosaic_0001>

<bundles_post_ra>
// kernel: tpu_custom_call.1
= control target key start
LH: loop header
LB: loop body
LE: loop exit
PB: predicated region body
PF: predicated region fallthrough
CT: control target
= control target key end

     0   :  { %11 = vsyncpa [#allocation4], 0  ;;  %s3451_s0 = inlined_call_operand.vmem [shape: f32[64,32], index: 0, kind: input, shape index: {}]   ;;  %s3452_s1 = inlined_call_operand.vmem [shape: f32[32,512], index: 1, kind: input, shape index: {}]   ;;  %s3453_s2 = inlined_call_operand.hbm [shape: f32[128,512], index: 2, kind: input, shape index: {}]   ;;  %s3454_s3 = inlined_call_operand.vmem [shape: f32[1,512], index: 3, kind: input, shape index: {}]   ;;  %s3455_s4 = inlined_call_operand.vmem [shape: f32[128,8], index: 4, kind: input, shape index: {}]   ;;  %s3456_s5 = inlined_call_operand.vmem [shape: f32[1,8], index: 5, kind: input, shape index: {}]   ;;  %s3457_s6 = inlined_call_operand.hbm [shape: f32[8,8], index: 6, kind: output, shape index: {}]  }
   0x1   :  { %12 = vsyncpa [#allocation5], 0  ;;  %s2299_s21 = smov [#allocation3]  }
   0x2   :  { %s22_s22 = sshll.u32 %s2299_s21, 4  ;;  %s23_s22 = int_to_ptr.vmem [resolvable:$true] %s22_s22 }
   0x3   :  { %s2263_s23 = scalar_lea.vmem %s23_s22, 8192  ;;  %p2268_p1 = scmp.lt.s32.totalorder %s23_s22, %s23_s22 }
   0x4   :  { %p2264_p0 = scmp.ne.s32.totalorder %s23_s22, %s2263_s23  ;;  %p2269_p2 = scmp.lt.s32.totalorder %s2263_s23, %s2263_s23 }
   0x6   :  { %p2270_p3 = por %p2269_p2, %p2268_p1 }
   0x8   :  { %p2271_p4 = pnand %p2270_p3, %p2264_p0 }
   0xa   :  { %2274 = shalt.err (!%p2271_p4)
}
   0xb   :  { %s2300_s24 = smov 512   ;;  %s2301_s25 = smov 32  }
   0xc   :  { %28 = dma.hbm_to_vmem [thread:$0]  %s3453_s2, 8192, %s23_s22, [#allocation4], %s2300_s24, %s2300_s24, %s2301_s25  }
   0xd   :  { %2295 = dma.done.wait [#allocation4], 8192  }
   0xe   :  { %2296 = vsyncadd [#allocation4], 4294959104  ;;  %v3458_v0 = vmov 0.0   ;;  %v59_v1 = vld [vmem:[%s3452_s1 + $0x68] sm:$0xff]  ;;  %v61_v2 = vld [vmem:[%s3452_s1 + $0x78] sm:$0xff]  ;;  %vm84_vm0 = vcmask 261120  }
   0xf   :  { %173 = vmatprep.mubr.f32.mxu0 %v3458_v0  ;;  %286 = vmatprep.mubr.f32.mxu1 %v3458_v0  ;;  %v58_v3 = vld [vmem:[%s3452_s1 + $0x60] sm:$0xff]  ;;  %v60_v4 = vld [vmem:[%s3452_s1 + $0x70] sm:$0xff]  ;;  %v55_v5 = vld [vmem:[%s3452_s1 + $0x48] sm:$0xff]  ;;  %vm2303_vm1 = vmmov 0   ;;  %s2304_s30 = smov [#allocation6]   ;;  %vm1940_vm2 = vcmask 64512  }
  0x10   :  { %133 = vmatprep.subr.mxu0 %v59_v1  ;;  %246 = vmatprep.subr.mxu1 %v61_v2  ;;  %v57_v6 = vld [vmem:[%s3452_s1 + $0x58] sm:$0xff]  ;;  %v54_v7 = vld [vmem:[%s3452_s1 + $0x40] sm:$0xff]  ;;  %v56_v8 = vld [vmem:[%s3452_s1 + $0x50] sm:$0xff]  ;;  %s1948_s7 = sshll.u32 %s2304_s30, 4  ;;  %s1949_s7 = int_to_ptr.vmem [resolvable:$true] %s1948_s7 }
  0x11   :  { %134 = vmatpush1.msra.mxu0 %v58_v3  ;;  %247 = vmatpush1.msra.mxu1 %v60_v4  ;;  %v51_v9 = vld [vmem:[%s3452_s1 + $0x28] sm:$0xff]  ;;  %v53_v10 = vld [vmem:[%s3452_s1 + $0x38] sm:$0xff]  ;;  %v50_v11 = vld [vmem:[%s3452_s1 + $0x20] sm:$0xff]  ;;  %s2275_s8 = scalar_lea.vmem %s1949_s7, 128  ;;  %p2280_p6 = scmp.lt.s32.totalorder %s1949_s7, %s1949_s7 }
  0x12   :  { %135 = vmatprep.subr.mxu0 %v55_v5  ;;  %248 = vmatprep.subr.mxu1 %v57_v6  ;;  %v52_v12 = vld [vmem:[%s3452_s1 + $0x30] sm:$0xff]  ;;  %v47_v13 = vld [vmem:[%s3452_s1 + $0x8] sm:$0xff]  ;;  %v49_v14 = vld [vmem:[%s3452_s1 + $0x18] sm:$0xff]  ;;  %p2276_p5 = scmp.ne.s32.totalorder %s1949_s7, %s2275_s8  ;;  %p2281_p7 = scmp.lt.s32.totalorder %s2275_s8, %s2275_s8 }
  0x13   :  { %136 = vmatpush1.msra.mxu0 %v54_v7  ;;  %249 = vmatpush1.msra.mxu1 %v56_v8  ;;  %v46_v15 = vld [vmem:[%s3452_s1] sm:$0xff]  ;;  %v48_v16 = vld [vmem:[%s3452_s1 + $0x10] sm:$0xff]  ;;  %v2396_v18 = vld [vmem:[#allocation3 + $0x1e8] sm:$0xff] }
  0x14   :  { %137 = vmatprep.subr.mxu0 %v51_v9  ;;  %250 = vmatprep.subr.mxu1 %v53_v10  ;;  %v38_v17 = vld [vmem:[%s3451_s0] sm:$0xff]  ;;  %3546 = vst [vmem:[#allocation9_spill] sm:$0xff] %v2396_v18  ;;  %v2398_v19 = vld [vmem:[#allocation3 + $0x1f8] sm:$0xff]  ;;  %v2402_v21 = vld [vmem:[#allocation3 + $0x1f0] sm:$0xff]  ;;  %p2282_p8 = por %p2281_p7, %p2280_p6 }
  0x15   :  { %138 = vmatpush1.msra.mxu0 %v50_v11  ;;  %251 = vmatpush1.msra.mxu1 %v52_v12  ;;  %3547 = vst [vmem:[#allocation10_spill] sm:$0xff] %v2398_v19  ;;  %v2400_v20 = vld [vmem:[#allocation3 + $0x1e0] sm:$0xff]  ;;  %v2406_v22 = vld [vmem:[#allocation3 + $0x1c8] sm:$0xff]  ;;  %v2408_v23 = vld [vmem:[#allocation3 + $0x1d8] sm:$0xff] }
  0x16   :  { %139 = vmatprep.subr.mxu0 %v47_v13  ;;  %252 = vmatprep.subr.mxu1 %v49_v14  ;;  %v2414_v24 = vld [vmem:[#allocation3 + $0x1c0] sm:$0xff]  ;;  %v2416_v25 = vld [vmem:[#allocation3 + $0x1d0] sm:$0xff]  ;;  %v39_v26 = vld [vmem:[%s3451_s0 + $0x8] sm:$0xff]  ;;  %p2283_p9 = pnand %p2282_p8, %p2276_p5 }
  0x17   :  { %140 = vmatpush1.msra.mxu0 %v46_v15  ;;  %253 = vmatpush1.msra.mxu1 %v48_v16  ;;  %v2425_v27 = vld [vmem:[#allocation3 + $0x1a8] sm:$0xff]  ;;  %v2427_v28 = vld [vmem:[#allocation3 + $0x1b8] sm:$0xff]  ;;  %v2431_v29 = vld [vmem:[#allocation3 + $0x1a0] sm:$0xff] }
  0x18   :  { %1964 = vmatmul.mubr.msk.f32.vlgmr.msra.gmra.mxu0 %vm84_vm0, %v38_v17  ;;  %1972 = vmatmul.mubr.msk.f32.vlgmr.msra.gmra.mxu1 %vm84_vm0, %v38_v17  ;;  %v2433_v30 = vld [vmem:[#allocation3 + $0x1b0] sm:$0xff]  ;;  %v2437_v31 = vld [vmem:[#allocation3 + $0x188] sm:$0xff]  ;;  %v2439_v32 = vld [vmem:[#allocation3 + $0x198] sm:$0xff] }
  0x19   :  { %438 = vmatprep.subr.mxu0 %v2396_v18  ;;  %509 = vmatprep.subr.mxu1 %v2398_v19  ;;  %v2445_v33 = vld [vmem:[#allocation3 + $0x180] sm:$0xff]  ;;  %v2447_v34 = vld [vmem:[#allocation3 + $0x190] sm:$0xff]  ;;  %v2456_v36 = vld [vmem:[#allocation3 + $0x168] sm:$0xff] }
  0x1a   :  { %439 = vmatpush1.msra.mxu0 %v2400_v20  ;;  %510 = vmatpush1.msra.mxu1 %v2402_v21  ;;  %v40_v35 = vld [vmem:[%s3451_s0 + $0x10] sm:$0xff]  ;;  %v2458_v37 = vld [vmem:[#allocation3 + $0x178] sm:$0xff]  ;;  %v2462_v38 = vld [vmem:[#allocation3 + $0x160] sm:$0xff] }
  0x1b   :  { %440 = vmatprep.subr.mxu0 %v2406_v22  ;;  %511 = vmatprep.subr.mxu1 %v2408_v23  ;;  %v2464_v39 = vld [vmem:[#allocation3 + $0x170] sm:$0xff]  ;;  %v2468_v40 = vld [vmem:[#allocation3 + $0x148] sm:$0xff]  ;;  %v2470_v41 = vld [vmem:[#allocation3 + $0x158] sm:$0xff] }
  0x1c   :  { %179 = vmatprep.mubr.f32.mxu0 %v3458_v0  ;;  %292 = vmatprep.mubr.f32.mxu1 %v3458_v0  ;;  %v2476_v42 = vld [vmem:[#allocation3 + $0x140] sm:$0xff]  ;;  %v2478_v43 = vld [vmem:[#allocation3 + $0x150] sm:$0xff]  ;;  %v41_v44 = vld [vmem:[%s3451_s0 + $0x18] sm:$0xff] }
  0x1d   :  { %441 = vmatpush1.msra.mxu0 %v2414_v24  ;;  %512 = vmatpush1.msra.mxu1 %v2416_v25  ;;  %v2487_v45 = vld [vmem:[#allocation3 + $0x128] sm:$0xff]  ;;  %v2489_v46 = vld [vmem:[#allocation3 + $0x138] sm:$0xff]  ;;  %v2493_v47 = vld [vmem:[#allocation3 + $0x120] sm:$0xff] }
  0x1e   :  { %1965 = vmatmul.mubr.msk.f32.gmra.mxu0 %vm84_vm0, %v39_v26  ;;  %1973 = vmatmul.mubr.msk.f32.gmra.mxu1 %vm84_vm0, %v39_v26  ;;  %v2495_v48 = vld [vmem:[#allocation3 + $0x130] sm:$0xff]  ;;  %v2499_v49 = vld [vmem:[#allocation3 + $0x108] sm:$0xff]  ;;  %v2501_v50 = vld [vmem:[#allocation3 + $0x118] sm:$0xff] }
  0x1f   :  { %442 = vmatprep.subr.mxu0 %v2425_v27  ;;  %513 = vmatprep.subr.mxu1 %v2427_v28  ;;  %v2507_v51 = vld [vmem:[#allocation3 + $0x100] sm:$0xff]  ;;  %v2509_v52 = vld [vmem:[#allocation3 + $0x110] sm:$0xff]  ;;  %v2518_v54 = vld [vmem:[#allocation3 + $0xe8] sm:$0xff] }
  0x20   :  { %443 = vmatpush1.msra.mxu0 %v2431_v29  ;;  %514 = vmatpush1.msra.mxu1 %v2433_v30  ;;  %v42_v53 = vld [vmem:[%s3451_s0 + $0x20] sm:$0xff]  ;;  %v2520_v55 = vld [vmem:[#allocation3 + $0xf8] sm:$0xff]  ;;  %v2526_v57 = vld [vmem:[#allocation3 + $0xf0] sm:$0xff] }
  0x21   :  { %444 = vmatprep.subr.mxu0 %v2437_v31  ;;  %515 = vmatprep.subr.mxu1 %v2439_v32  ;;  %v2524_v56 = vld [vmem:[#allocation3 + $0xe0] sm:$0xff]  ;;  %v2530_v58 = vld [vmem:[#allocation3 + $0xc8] sm:$0xff]  ;;  %v2532_v59 = vld [vmem:[#allocation3 + $0xd8] sm:$0xff] }
  0x22   :  { %185 = vmatprep.mubr.f32.mxu0 %v3458_v0  ;;  %298 = vmatprep.mubr.f32.mxu1 %v3458_v0  ;;  %v2538_v60 = vld [vmem:[#allocation3 + $0xc0] sm:$0xff]  ;;  %v2540_v61 = vld [vmem:[#allocation3 + $0xd0] sm:$0xff]  ;;  %v43_v62 = vld [vmem:[%s3451_s0 + $0x28] sm:$0xff] }
  0x23   :  { %445 = vmatpush1.msra.mxu0 %v2445_v33  ;;  %516 = vmatpush1.msra.mxu1 %v2447_v34  ;;  %v2549_v63 = vld [vmem:[#allocation3 + $0xa8] sm:$0xff]  ;;  %v2551_v1 = vld [vmem:[#allocation3 + $0xb8] sm:$0xff]  ;;  %v2555_v2 = vld [vmem:[#allocation3 + $0xa0] sm:$0xff] }
  0x24   :  { %1966 = vmatmul.mubr.msk.f32.gmra.mxu0 %vm84_vm0, %v40_v35  ;;  %1974 = vmatmul.mubr.msk.f32.gmra.mxu1 %vm84_vm0, %v40_v35  ;;  %v2557_v3 = vld [vmem:[#allocation3 + $0xb0] sm:$0xff]  ;;  %v2561_v4 = vld [vmem:[#allocation3 + $0x88] sm:$0xff]  ;;  %v2563_v5 = vld [vmem:[#allocation3 + $0x98] sm:$0xff] }
  0x25   :  { %446 = vmatprep.subr.mxu0 %v2456_v36  ;;  %517 = vmatprep.subr.mxu1 %v2458_v37  ;;  %3548 = vst [vmem:[#allocation11_spill] sm:$0xff] %v2561_v4  ;;  %3549 = vst [vmem:[#allocation12_spill] sm:$0xff] %v2563_v5  ;;  %v2569_v6 = vld [vmem:[#allocation3 + $0x80] sm:$0xff]  ;;  %v2571_v7 = vld [vmem:[#allocation3 + $0x90] sm:$0xff] }
  0x26   :  { %447 = vmatpush1.msra.mxu0 %v2462_v38  ;;  %518 = vmatpush1.msra.mxu1 %v2464_v39  ;;  %3550 = vst [vmem:[#allocation13_spill] sm:$0xff] %v2569_v6  ;;  %3551 = vst [vmem:[#allocation14_spill] sm:$0xff] %v2571_v7  ;;  %v44_v8 = vld [vmem:[%s3451_s0 + $0x30] sm:$0xff]  ;;  %v2580_v9 = vld [vmem:[#allocation3 + $0x68] sm:$0xff] }
  0x27   :  { %448 = vmatprep.subr.mxu0 %v2468_v40  ;;  %519 = vmatprep.subr.mxu1 %v2470_v41  ;;  %3552 = vst [vmem:[#allocation15_spill] sm:$0xff] %v2580_v9  ;;  %v2582_v10 = vld [vmem:[#allocation3 + $0x78] sm:$0xff]  ;;  %v2586_v11 = vld [vmem:[#allocation3 + $0x60] sm:$0xff]  ;;  %v2588_v12 = vld [vmem:[#allocation3 + $0x70] sm:$0xff] }
  0x28   :  { %191 = vmatprep.mubr.f32.mxu0 %v3458_v0  ;;  %304 = vmatprep.mubr.f32.mxu1 %v3458_v0  ;;  %3553 = vst [vmem:[#allocation16_spill] sm:$0xff] %v2582_v10  ;;  %3554 = vst [vmem:[#allocation17_spill] sm:$0xff] %v2586_v11  ;;  %v2592_v13 = vld [vmem:[#allocation3 + $0x48] sm:$0xff]  ;;  %v2594_v14 = vld [vmem:[#allocation3 + $0x58] sm:$0xff] }
  0x29   :  { %449 = vmatpush1.msra.mxu0 %v2476_v42  ;;  %520 = vmatpush1.msra.mxu1 %v2478_v43  ;;  %3555 = vst [vmem:[#allocation18_spill] sm:$0xff] %v2588_v12  ;;  %3556 = vst [vmem:[#allocation19_spill] sm:$0xff] %v2592_v13  ;;  %v2600_v15 = vld [vmem:[#allocation3 + $0x40] sm:$0xff]  ;;  %v2602_v16 = vld [vmem:[#allocation3 + $0x50] sm:$0xff] }
  0x2a   :  { %1967 = vmatmul.mubr.msk.f32.gmra.mxu0 %vm84_vm0, %v41_v44  ;;  %1975 = vmatmul.mubr.msk.f32.gmra.mxu1 %vm84_vm0, %v41_v44  ;;  %3557 = vst [vmem:[#allocation20_spill] sm:$0xff] %v2594_v14  ;;  %3558 = vst [vmem:[#allocation21_spill] sm:$0xff] %v2600_v15  ;;  %v45_v17 = vld [vmem:[%s3451_s0 + $0x38] sm:$0xff]  ;;  %v2611_v26 = vld [vmem:[#allocation3 + $0x28] sm:$0xff] }
  0x2b   :  { %450 = vmatprep.subr.mxu0 %v2487_v45  ;;  %521 = vmatprep.subr.mxu1 %v2489_v46  ;;  %3559 = vst [vmem:[#allocation22_spill] sm:$0xff] %v2602_v16  ;;  %3560 = vst [vmem:[#allocation23_spill] sm:$0xff] %v2611_v26  ;;  %v2613_v35 = vld [vmem:[#allocation3 + $0x38] sm:$0xff]  ;;  %v2617_v44 = vld [vmem:[#allocation3 + $0x20] sm:$0xff] }
  0x2c   :  { %451 = vmatpush1.msra.mxu0 %v2493_v47  ;;  %522 = vmatpush1.msra.mxu1 %v2495_v48  ;;  %3561 = vst [vmem:[#allocation24_spill] sm:$0xff] %v2613_v35  ;;  %3562 = vst [vmem:[#allocation25_spill] sm:$0xff] %v2617_v44 }
  0x2d   :  { %452 = vmatprep.subr.mxu0 %v2499_v49  ;;  %523 = vmatprep.subr.mxu1 %v2501_v50 }
  0x2e   :  { %197 = vmatprep.mubr.f32.mxu0 %v3458_v0  ;;  %310 = vmatprep.mubr.f32.mxu1 %v3458_v0 }
  0x2f   :  { %453 = vmatpush1.msra.mxu0 %v2507_v51  ;;  %524 = vmatpush1.msra.mxu1 %v2509_v52 }
  0x30   :  { %1968 = vmatmul.mubr.msk.f32.gmra.mxu0 %vm84_vm0, %v42_v53  ;;  %1976 = vmatmul.mubr.msk.f32.gmra.mxu1 %vm84_vm0, %v42_v53  ;;  %v2619_v53 = vld [vmem:[#allocation3 + $0x30] sm:$0xff] }
  0x31   :  { %454 = vmatprep.subr.mxu0 %v2518_v54  ;;  %525 = vmatprep.subr.mxu1 %v2520_v55  ;;  %3563 = vst [vmem:[#allocation26_spill] sm:$0xff] %v2619_v53 }
  0x32   :  { %455 = vmatpush1.msra.mxu0 %v2524_v56  ;;  %526 = vmatpush1.msra.mxu1 %v2526_v57 }
  0x33   :  { %456 = vmatprep.subr.mxu0 %v2530_v58  ;;  %527 = vmatprep.subr.mxu1 %v2532_v59 }
  0x34   :  { %203 = vmatprep.mubr.f32.mxu0 %v3458_v0  ;;  %316 = vmatprep.mubr.f32.mxu1 %v3458_v0 }
  0x35   :  { %457 = vmatpush1.msra.mxu0 %v2538_v60  ;;  %528 = vmatpush1.msra.mxu1 %v2540_v61 }
  0x36   :  { %1969 = vmatmul.mubr.msk.f32.gmra.mxu0 %vm84_vm0, %v43_v62  ;;  %1977 = vmatmul.mubr.msk.f32.gmra.mxu1 %vm84_vm0, %v43_v62  ;;  %v2623_v62 = vld [vmem:[#allocation3 + $0x8] sm:$0xff] }
  0x37   :  { %458 = vmatprep.subr.mxu0 %v2549_v63  ;;  %529 = vmatprep.subr.mxu1 %v2551_v1  ;;  %3564 = vst [vmem:[#allocation27_spill] sm:$0xff] %v2623_v62 }
  0x38   :  { %459 = vmatpush1.msra.mxu0 %v2555_v2  ;;  %530 = vmatpush1.msra.mxu1 %v2557_v3 }
  0x39   :  { %460 = vmatprep.subr.mxu0 %v2561_v4  ;;  %531 = vmatprep.subr.mxu1 %v2563_v5 }
  0x3a   :  { %209 = vmatprep.mubr.f32.mxu0 %v3458_v0  ;;  %322 = vmatprep.mubr.f32.mxu1 %v3458_v0 }
  0x3b   :  { %461 = vmatpush1.msra.mxu0 %v2569_v6  ;;  %532 = vmatpush1.msra.mxu1 %v2571_v7 }
  0x3c   :  { %1970 = vmatmul.mubr.msk.f32.gmra.mxu0 %vm84_vm0, %v44_v8  ;;  %1978 = vmatmul.mubr.msk.f32.gmra.mxu1 %vm84_vm0, %v44_v8  ;;  %v2625_v8 = vld [vmem:[#allocation3 + $0x18] sm:$0xff] }
  0x3d   :  { %462 = vmatprep.subr.mxu0 %v2580_v9  ;;  %533 = vmatprep.subr.mxu1 %v2582_v10  ;;  %3565 = vst [vmem:[#allocation28_spill] sm:$0xff] %v2625_v8 }
  0x3e   :  { %463 = vmatpush1.msra.mxu0 %v2586_v11  ;;  %534 = vmatpush1.msra.mxu1 %v2588_v12 }
  0x3f   :  { %464 = vmatprep.subr.mxu0 %v2592_v13  ;;  %535 = vmatprep.subr.mxu1 %v2594_v14 }
  0x40   :  { %215 = vmatprep.mubr.f32.mxu0 %v3458_v0  ;;  %328 = vmatprep.mubr.f32.mxu1 %v3458_v0  ;;  %v2629_v0 = vld [vmem:[#allocation3] sm:$0xff] }
  0x41   :  { %465 = vmatpush1.msra.mxu0 %v2600_v15  ;;  %536 = vmatpush1.msra.mxu1 %v2602_v16  ;;  %3566 = vst [vmem:[#allocation29_spill] sm:$0xff] %v2629_v0  ;;  %v2633_v16 = vld [vmem:[#allocation3 + $0x10] sm:$0xff] }
  0x42   :  { %1971 = vmatmul.mubr.msk.f32.gmra.mxu0 %vm84_vm0, %v45_v17  ;;  %1979 = vmatmul.mubr.msk.f32.gmra.mxu1 %vm84_vm0, %v45_v17  ;;  %3567 = vst [vmem:[#allocation30_spill] sm:$0xff] %v2633_v16  ;;  %v3568_v17 = vmov 0.0  }
  0x43   :  { %466 = vmatprep.subr.mxu0 %v2611_v26  ;;  %537 = vmatprep.subr.mxu1 %v2613_v35 }
  0x44   :  { %467 = vmatpush1.msra.mxu0 %v2617_v44  ;;  %538 = vmatpush1.msra.mxu1 %v2619_v53 }
  0x45   :  { %468 = vmatprep.subr.mxu0 %v2623_v62  ;;  %539 = vmatprep.subr.mxu1 %v2625_v8 }
  0x46   :  { %469 = vmatpush1.msra.mxu0 %v2629_v0  ;;  %502 = vmatprep.mubr.f32.mxu0 %v3568_v17 }
  0x47   :  { %540 = vmatpush1.msra.mxu1 %v2633_v16  ;;  %573 = vmatprep.mubr.f32.mxu1 %v3568_v17 }
  0x48   :  { %503 = vmatmul.mubr.f32.vlgmr.msra.gmra.mxu0 %v3568_v17  ;;  %574 = vmatmul.mubr.f32.vlgmr.msra.gmra.mxu1 %v3568_v17 }
  0x49   :  { %615 = vmatprep.subr.mxu0 %v2396_v18  ;;  %686 = vmatprep.subr.mxu1 %v2398_v19 }
  0x4a   :  { %616 = vmatpush1.msra.mxu0 %v2400_v20  ;;  %687 = vmatpush1.msra.mxu1 %v2402_v21 }
  0x4b   :  { %617 = vmatprep.subr.mxu0 %v2406_v22  ;;  %688 = vmatprep.subr.mxu1 %v2408_v23 }
  0x4c   :  { %618 = vmatpush1.msra.mxu0 %v2414_v24  ;;  %689 = vmatpush1.msra.mxu1 %v2416_v25 }
  0x4d   :  { %619 = vmatprep.subr.mxu0 %v2425_v27  ;;  %690 = vmatprep.subr.mxu1 %v2427_v28 }
  0x4e   :  { %620 = vmatpush1.msra.mxu0 %v2431_v29  ;;  %691 = vmatpush1.msra.mxu1 %v2433_v30 }
  0x4f   :  { %621 = vmatprep.subr.mxu0 %v2437_v31  ;;  %692 = vmatprep.subr.mxu1 %v2439_v32 }
  0x50   :  { %622 = vmatpush1.msra.mxu0 %v2445_v33  ;;  %693 = vmatpush1.msra.mxu1 %v2447_v34 }
  0x51   :  { %623 = vmatprep.subr.mxu0 %v2456_v36  ;;  %694 = vmatprep.subr.mxu1 %v2458_v37 }
  0x52   :  { %624 = vmatpush1.msra.mxu0 %v2462_v38  ;;  %695 = vmatpush1.msra.mxu1 %v2464_v39 }
  0x53   :  { %625 = vmatprep.subr.mxu0 %v2468_v40  ;;  %696 = vmatprep.subr.mxu1 %v2470_v41 }
  0x54   :  { %626 = vmatpush1.msra.mxu0 %v2476_v42  ;;  %697 = vmatpush1.msra.mxu1 %v2478_v43 }
  0x55   :  { %627 = vmatprep.subr.mxu0 %v2487_v45  ;;  %698 = vmatprep.subr.mxu1 %v2489_v46 }
  0x56   :  { %628 = vmatpush1.msra.mxu0 %v2493_v47  ;;  %699 = vmatpush1.msra.mxu1 %v2495_v48 }
  0x57   :  { %629 = vmatprep.subr.mxu0 %v2499_v49  ;;  %700 = vmatprep.subr.mxu1 %v2501_v50 }
  0x58   :  { %630 = vmatpush1.msra.mxu0 %v2507_v51  ;;  %701 = vmatpush1.msra.mxu1 %v2509_v52 }
  0x59   :  { %631 = vmatprep.subr.mxu0 %v2518_v54  ;;  %702 = vmatprep.subr.mxu1 %v2520_v55 }
  0x5a   :  { %632 = vmatpush1.msra.mxu0 %v2524_v56  ;;  %703 = vmatpush1.msra.mxu1 %v2526_v57 }
  0x5b   :  { %633 = vmatprep.subr.mxu0 %v2530_v58  ;;  %704 = vmatprep.subr.mxu1 %v2532_v59 }
  0x5c   :  { %634 = vmatpush1.msra.mxu0 %v2538_v60  ;;  %705 = vmatpush1.msra.mxu1 %v2540_v61 }
  0x5d   :  { %635 = vmatprep.subr.mxu0 %v2549_v63  ;;  %706 = vmatprep.subr.mxu1 %v2551_v1 }
  0x5e   :  { %636 = vmatpush1.msra.mxu0 %v2555_v2  ;;  %707 = vmatpush1.msra.mxu1 %v2557_v3 }
  0x5f   :  { %637 = vmatprep.subr.mxu0 %v2561_v4  ;;  %708 = vmatprep.subr.mxu1 %v2563_v5  ;;  %v3569_v4 = vld [vmem:[#allocation22_spill] sm:$0xff] }
  0x60   :  { %638 = vmatpush1.msra.mxu0 %v2569_v6  ;;  %709 = vmatpush1.msra.mxu1 %v2571_v7 }
  0x61   :  { %639 = vmatprep.subr.mxu0 %v2580_v9  ;;  %710 = vmatprep.subr.mxu1 %v2582_v10 }
  0x62   :  { %640 = vmatpush1.msra.mxu0 %v2586_v11  ;;  %711 = vmatpush1.msra.mxu1 %v2588_v12 }
  0x63   :  { %641 = vmatprep.subr.mxu0 %v2592_v13  ;;  %712 = vmatprep.subr.mxu1 %v2594_v14 }
  0x64   :  { %642 = vmatpush1.msra.mxu0 %v2600_v15  ;;  %713 = vmatpush1.msra.mxu1 %v3569_v4 }
  0x65   :  { %643 = vmatprep.subr.mxu0 %v2611_v26  ;;  %714 = vmatprep.subr.mxu1 %v2613_v35  ;;  %v64_v35 = vlaneseq }
  0x66   :  { %644 = vmatpush1.msra.mxu0 %v2617_v44  ;;  %715 = vmatpush1.msra.mxu1 %v2619_v53 }
  0x67   :  { %645 = vmatprep.subr.mxu0 %v2623_v62  ;;  %716 = vmatprep.subr.mxu1 %v2625_v8  ;;  %v65_v44 = vshrl.u32 %v64_v35, 7 }
  0x68   :  { %646 = vmatpush1.msra.mxu0 %v2629_v0  ;;  %679 = vmatprep.mubr.f32.mxu0 %v3568_v17  ;;  %v62_v0 = vld [vmem:[%s3454_s3] sm:$0xf] }
  0x69   :  { %717 = vmatpush1.msra.mxu1 %v2633_v16  ;;  %750 = vmatprep.mubr.f32.mxu1 %v3568_v17  ;;  %v66_v62 = vsub.s32 0, %v65_v44  ;;  %v74_v8 = vsub.s32 2, %v65_v44  ;;  %v70_v17 = vsub.s32 1, %v65_v44 }
  0x6a   :  { %792 = vmatprep.subr.mxu0 %v2396_v18  ;;  %863 = vmatprep.subr.mxu1 %v2398_v19  ;;  %v78_v18 = vsub.s32 3, %v65_v44 }
  0x6b   :  { %v67_v15 = vrot.slane %v62_v0, %v66_v62  ;;  %v2722_v19 = vrot.slane %v62_v0, %v74_v8  ;;  %v71_v13 = vrot.slane %v62_v0, %v70_v17 }
  0x6c   :  { %v2724_v12 = vrot.slane %v62_v0, %v78_v18 }
  0xd8   :  { %v2711_v26 = vpop.f32.mrf.mxu0  ;;  %v2713_v53 = vpop.f32.mrf.mxu1 }
  0xda   :  { %v2718_v4 = vpop.f32.mrf.mxu0  ;;  %v2720_v16 = vpop.f32.mrf.mxu1 }
  0xde   :  { %v181_v35 = vpop.f32.mrf.mxu0  ;;  %v294_v14 = vpop.f32.mrf.mxu1 }
  0xdf   :  { %v2726_v11 = vadd.f32 %v181_v35, %v67_v15  ;;  %v2729_v10 = vadd.f32 %v294_v14, %v2722_v19 }
  0xe0   :  { %v183_v9 = vpop.f32.mrf.mxu0  ;;  %v296_v7 = vpop.f32.mrf.mxu1 }
  0xe1   :  { %3570 = vst [vmem:[#allocation31_spill] sm:$0xff] %v2726_v11  ;;  %3571 = vst [vmem:[#allocation32_spill] sm:$0xff] %v2729_v10  ;;  %v2731_v6 = vadd.f32 %v183_v9, %v71_v13  ;;  %v2734_v5 = vadd.f32 %v296_v7, %v2724_v12 }
  0xe3   :  { %3572 = vst [vmem:[#allocation33_spill] sm:$0xff] %v2731_v6  ;;  %3573 = vst [vmem:[#allocation34_spill] sm:$0xff] %v2734_v5 }
  0xe4   :  { %v187_v44 = vpop.f32.mrf.mxu0  ;;  %v300_v62 = vpop.f32.mrf.mxu1 }
  0xe5   :  { %v2736_v8 = vadd.f32 %v187_v44, %v67_v15  ;;  %v2739_v17 = vadd.f32 %v300_v62, %v2722_v19 }
  0xe6   :  { %v189_v0 = vpop.f32.mrf.mxu0  ;;  %v302_v18 = vpop.f32.mrf.mxu1 }
  0xe7   :  { %3574 = vst [vmem:[#allocation35_spill] sm:$0xff] %v2736_v8  ;;  %3575 = vst [vmem:[#allocation36_spill] sm:$0xff] %v2739_v17  ;;  %v2741_v35 = vadd.f32 %v189_v0, %v71_v13  ;;  %v2744_v14 = vadd.f32 %v302_v18, %v2724_v12 }
  0xe9   :  { %3576 = vst [vmem:[#allocation37_spill] sm:$0xff] %v2741_v35  ;;  %3577 = vst [vmem:[#allocation38_spill] sm:$0xff] %v2744_v14 }
  0xea   :  { %v193_v10 = vpop.f32.mrf.mxu0  ;;  %v306_v9 = vpop.f32.mrf.mxu1 }
  0xeb   :  { %v2746_v6 = vadd.f32 %v193_v10, %v67_v15  ;;  %v2749_v7 = vadd.f32 %v306_v9, %v2722_v19 }
  0xec   :  { %v195_v5 = vpop.f32.mrf.mxu0  ;;  %v308_v44 = vpop.f32.mrf.mxu1 }
  0xed   :  { %3578 = vst [vmem:[#allocation39_spill] sm:$0xff] %v2746_v6  ;;  %3579 = vst [vmem:[#allocation40_spill] sm:$0xff] %v2749_v7  ;;  %v2751_v8 = vadd.f32 %v195_v5, %v71_v13  ;;  %v2754_v62 = vadd.f32 %v308_v44, %v2724_v12 }
  0xef   :  { %3580 = vst [vmem:[#allocation41_spill] sm:$0xff] %v2751_v8  ;;  %3581 = vst [vmem:[#allocation42_spill] sm:$0xff] %v2754_v62 }
  0xf0   :  { %v199_v17 = vpop.f32.mrf.mxu0  ;;  %v312_v0 = vpop.f32.mrf.mxu1 }
  0xf1   :  { %v2756_v35 = vadd.f32 %v199_v17, %v67_v15  ;;  %v2759_v18 = vadd.f32 %v312_v0, %v2722_v19 }
  0xf2   :  { %v201_v14 = vpop.f32.mrf.mxu0  ;;  %v314_v10 = vpop.f32.mrf.mxu1 }
  0xf3   :  { %3582 = vst [vmem:[#allocation43_spill] sm:$0xff] %v2756_v35  ;;  %3583 = vst [vmem:[#allocation44_spill] sm:$0xff] %v2759_v18  ;;  %v2761_v6 = vadd.f32 %v201_v14, %v71_v13  ;;  %v2764_v9 = vadd.f32 %v314_v10, %v2724_v12 }
  0xf5   :  { %3584 = vst [vmem:[#allocation45_spill] sm:$0xff] %v2761_v6  ;;  %3585 = vst [vmem:[#allocation46_spill] sm:$0xff] %v2764_v9 }
  0xf6   :  { %v205_v7 = vpop.f32.mrf.mxu0  ;;  %v318_v5 = vpop.f32.mrf.mxu1 }
  0xf7   :  { %v2766_v8 = vadd.f32 %v205_v7, %v67_v15  ;;  %v2769_v44 = vadd.f32 %v318_v5, %v2722_v19 }
  0xf8   :  { %v207_v62 = vpop.f32.mrf.mxu0  ;;  %v320_v17 = vpop.f32.mrf.mxu1 }
  0xf9   :  { %3586 = vst [vmem:[#allocation47_spill] sm:$0xff] %v2766_v8  ;;  %3587 = vst [vmem:[#allocation48_spill] sm:$0xff] %v2769_v44  ;;  %v2771_v35 = vadd.f32 %v207_v62, %v71_v13  ;;  %v2774_v0 = vadd.f32 %v320_v17, %v2724_v12 }
  0xfb   :  { %3588 = vst [vmem:[#allocation49_spill] sm:$0xff] %v2771_v35  ;;  %3589 = vst [vmem:[#allocation50_spill] sm:$0xff] %v2774_v0 }
  0xfc   :  { %v211_v18 = vpop.f32.mrf.mxu0  ;;  %v324_v14 = vpop.f32.mrf.mxu1 }
  0xfd   :  { %v2776_v6 = vadd.f32 %v211_v18, %v67_v15  ;;  %v2779_v10 = vadd.f32 %v324_v14, %v2722_v19 }
  0xfe   :  { %v213_v9 = vpop.f32.mrf.mxu0  ;;  %v326_v7 = vpop.f32.mrf.mxu1 }
  0xff   :  { %3590 = vst [vmem:[#allocation51_spill] sm:$0xff] %v2776_v6  ;;  %3591 = vst [vmem:[#allocation52_spill] sm:$0xff] %v2779_v10  ;;  %v2781_v8 = vadd.f32 %v213_v9, %v71_v13  ;;  %v2784_v5 = vadd.f32 %v326_v7, %v2724_v12  ;;  %v176_v9 = vadd.f32 %v2711_v26, %v67_v15 }
 0x100   :  { %v178_v7 = vadd.f32 %v2718_v4, %v71_v13 }
 0x101   :  { %3592 = vst [vmem:[#allocation53_spill] sm:$0xff] %v2781_v8  ;;  %3593 = vst [vmem:[#allocation54_spill] sm:$0xff] %v2784_v5 }
 0x102   :  { %v217_v44 = vpop.f32.mrf.mxu0  ;;  %v330_v62 = vpop.f32.mrf.mxu1 }
 0x103   :  { %v2786_v35 = vadd.f32 %v217_v44, %v67_v15  ;;  %v2789_v17 = vadd.f32 %v330_v62, %v2722_v19 }
 0x104   :  { %v219_v0 = vpop.f32.mrf.mxu0  ;;  %v332_v18 = vpop.f32.mrf.mxu1 }
 0x105   :  { %3594 = vst [vmem:[#allocation55_spill] sm:$0xff] %v2786_v35  ;;  %3595 = vst [vmem:[#allocation56_spill] sm:$0xff] %v2789_v17  ;;  %v2791_v6 = vadd.f32 %v219_v0, %v71_v13  ;;  %v2794_v14 = vadd.f32 %v332_v18, %v2724_v12  ;;  %v289_v0 = vadd.f32 %v2713_v53, %v2722_v19 }
 0x106   :  { %v291_v18 = vadd.f32 %v2720_v16, %v2724_v12 }
 0x107   :  { %3596 = vst [vmem:[#allocation57_spill] sm:$0xff] %v2791_v6  ;;  %3597 = vst [vmem:[#allocation58_spill] sm:$0xff] %v2794_v14 }
 0x108   :  { %v504_v10 = vpop.f32.mrf.mxu0  ;;  %v575_v62 = vpop.f32.mrf.mxu1 }
 0x109   :  { %v580_v5 = vadd.f32 %v504_v10, %v176_v9  ;;  %v582_v17 = vadd.f32 %v575_v62, %v289_v0  ;;  %v3601_v62 = vld [vmem:[#allocation14_spill] sm:$0xff]  ;;  %v3602_v0 = vld [vmem:[#allocation15_spill] sm:$0xff] }
 0x10a   :  { %v506_v8 = vpop.f32.mrf.mxu0  ;;  %v577_v6 = vpop.f32.mrf.mxu1 }
 0x10b   :  { %v1980_v11 = vmul.f32 -1.442695, %v580_v5  ;;  %v581_v44 = vadd.f32 %v506_v8, %v178_v7  ;;  %v1982_v15 = vmul.f32 -1.442695, %v582_v17  ;;  %v583_v14 = vadd.f32 %v577_v6, %v291_v18  ;;  %v3598_v17 = vld [vmem:[#allocation11_spill] sm:$0xff]  ;;  %v3603_v18 = vld [vmem:[#allocation16_spill] sm:$0xff] }
 0x10d   :  { %2063 = vpow2.f32 %v1980_v11  ;;  %v1981_v35 = vmul.f32 -1.442695, %v581_v44  ;;  %v3600_v44 = vld [vmem:[#allocation13_spill] sm:$0xff] }
 0x10f   :  { %2065 = vpow2.f32 %v1981_v35 }
 0x110   :  { %2067 = vpow2.f32 %v1982_v15  ;;  %v3604_v15 = vld [vmem:[#allocation17_spill] sm:$0xff] }
 0x11a   :  { %v2064_v26 = vpop.eup %2063 }
 0x11b   :  { %v593_v4 = vadd.f32 1.0, %v2064_v26  ;;  %v3605_v26 = vld [vmem:[#allocation18_spill] sm:$0xff] }
 0x11c   :  { %v2066_v13 = vpop.eup %2065 }
 0x11d   :  { %2069 = vrcp.f32 %v593_v4  ;;  %v594_v8 = vadd.f32 1.0, %v2066_v13  ;;  %v2068_v11 = vpop.eup %2067  ;;  %v3606_v4 = vld [vmem:[#allocation19_spill] sm:$0xff]  ;;  %v3607_v13 = vld [vmem:[#allocation20_spill] sm:$0xff] }
 0x11e   :  { %2071 = vtanh.f32 %v583_v14  ;;  %v595_v19 = vadd.f32 1.0, %v2068_v11  ;;  %v3599_v14 = vld [vmem:[#allocation12_spill] sm:$0xff]  ;;  %v3609_v11 = vld [vmem:[#allocation22_spill] sm:$0xff] }
 0x11f   :  { %2073 = vrcp.f32 %v594_v8  ;;  %v3608_v8 = vld [vmem:[#allocation21_spill] sm:$0xff] }
 0x120   :  { %2075 = vrcp.f32 %v595_v19  ;;  %v3613_v19 = vld [vmem:[#allocation26_spill] sm:$0xff] }
 0x12a   :  { %v2070_v35 = vpop.eup %2069 }
 0x12b   :  { %v2072_v10 = vpop.eup %2071 }
 0x12c   :  { %v2074_v5 = vpop.eup %2073  ;;  %v604_v9 = vmul.f32 %v2072_v10, %v2070_v35  ;;  %v3610_v35 = vld [vmem:[#allocation23_spill] sm:$0xff]  ;;  %v3611_v10 = vld [vmem:[#allocation24_spill] sm:$0xff] }
 0x12d   :  { %v603_v53 = vmul.f32 0.0, %v2074_v5  ;;  %v2076_v6 = vpop.eup %2075  ;;  %v3612_v5 = vld [vmem:[#allocation25_spill] sm:$0xff] }
 0x12f   :  { %v2802_v7 = vadd.f32 %v604_v9, %v603_v53  ;;  %v3614_v53 = vld [vmem:[#allocation27_spill] sm:$0xff]  ;;  %v3615_v9 = vld [vmem:[#allocation28_spill] sm:$0xff] }
 0x131   :  { %2077 = vtanh.f32 %v2802_v7 }
 0x13e   :  { %v2078_v12 = vpop.eup %2077 }
 0x13f   :  { %v607_v16 = vmul.f32 %v2078_v12, %v2076_v6  ;;  %v3616_v6 = vld [vmem:[#allocation29_spill] sm:$0xff]  ;;  %v3617_v12 = vmov 0.0  }
 0x141   :  { %680 = vmatmul.mubr.f32.vlgmr.msra.gmra.mxu0 %v607_v16  ;;  %751 = vmatmul.mubr.f32.vlgmr.msra.gmra.mxu1 %v607_v16  ;;  %v3618_v16 = vld [vmem:[#allocation30_spill] sm:$0xff] }
 0x142   :  { %793 = vmatpush1.msra.mxu0 %v2400_v20  ;;  %864 = vmatpush1.msra.mxu1 %v2402_v21 }
 0x143   :  { %794 = vmatprep.subr.mxu0 %v2406_v22  ;;  %865 = vmatprep.subr.mxu1 %v2408_v23 }
 0x144   :  { %795 = vmatpush1.msra.mxu0 %v2414_v24  ;;  %866 = vmatpush1.msra.mxu1 %v2416_v25 }
 0x145   :  { %796 = vmatprep.subr.mxu0 %v2425_v27  ;;  %867 = vmatprep.subr.mxu1 %v2427_v28 }
 0x146   :  { %797 = vmatpush1.msra.mxu0 %v2431_v29  ;;  %868 = vmatpush1.msra.mxu1 %v2433_v30 }
 0x147   :  { %798 = vmatprep.subr.mxu0 %v2437_v31  ;;  %869 = vmatprep.subr.mxu1 %v2439_v32 }
 0x148   :  { %799 = vmatpush1.msra.mxu0 %v2445_v33  ;;  %870 = vmatpush1.msra.mxu1 %v2447_v34 }
 0x149   :  { %800 = vmatprep.subr.mxu0 %v2456_v36  ;;  %871 = vmatprep.subr.mxu1 %v2458_v37 }
 0x14a   :  { %801 = vmatpush1.msra.mxu0 %v2462_v38  ;;  %872 = vmatpush1.msra.mxu1 %v2464_v39 }
 0x14b   :  { %802 = vmatprep.subr.mxu0 %v2468_v40  ;;  %873 = vmatprep.subr.mxu1 %v2470_v41 }
 0x14c   :  { %803 = vmatpush1.msra.mxu0 %v2476_v42  ;;  %874 = vmatpush1.msra.mxu1 %v2478_v43 }
 0x14d   :  { %804 = vmatprep.subr.mxu0 %v2487_v45  ;;  %875 = vmatprep.subr.mxu1 %v2489_v46 }
 0x14e   :  { %805 = vmatpush1.msra.mxu0 %v2493_v47  ;;  %876 = vmatpush1.msra.mxu1 %v2495_v48 }
 0x14f   :  { %806 = vmatprep.subr.mxu0 %v2499_v49  ;;  %877 = vmatprep.subr.mxu1 %v2501_v50 }
 0x150   :  { %807 = vmatpush1.msra.mxu0 %v2507_v51  ;;  %878 = vmatpush1.msra.mxu1 %v2509_v52 }
 0x151   :  { %808 = vmatprep.subr.mxu0 %v2518_v54  ;;  %879 = vmatprep.subr.mxu1 %v2520_v55 }
 0x152   :  { %809 = vmatpush1.msra.mxu0 %v2524_v56  ;;  %880 = vmatpush1.msra.mxu1 %v2526_v57 }
 0x153   :  { %810 = vmatprep.subr.mxu0 %v2530_v58  ;;  %881 = vmatprep.subr.mxu1 %v2532_v59 }
 0x154   :  { %811 = vmatpush1.msra.mxu0 %v2538_v60  ;;  %882 = vmatpush1.msra.mxu1 %v2540_v61 }
 0x155   :  { %812 = vmatprep.subr.mxu0 %v2549_v63  ;;  %883 = vmatprep.subr.mxu1 %v2551_v1 }
 0x156   :  { %813 = vmatpush1.msra.mxu0 %v2555_v2  ;;  %884 = vmatpush1.msra.mxu1 %v2557_v3 }
 0x157   :  { %814 = vmatprep.subr.mxu0 %v3598_v17  ;;  %885 = vmatprep.subr.mxu1 %v3599_v14 }
 0x158   :  { %815 = vmatpush1.msra.mxu0 %v3600_v44  ;;  %886 = vmatpush1.msra.mxu1 %v3601_v62 }
 0x159   :  { %816 = vmatprep.subr.mxu0 %v3602_v0  ;;  %887 = vmatprep.subr.mxu1 %v3603_v18 }
 0x15a   :  { %817 = vmatpush1.msra.mxu0 %v3604_v15  ;;  %888 = vmatpush1.msra.mxu1 %v3605_v26  ;;  %v3623_v26 = vld [vmem:[#allocation32_spill] sm:$0xff] }
 0x15b   :  { %818 = vmatprep.subr.mxu0 %v3606_v4  ;;  %889 = vmatprep.subr.mxu1 %v3607_v13 }
 0x15c   :  { %819 = vmatpush1.msra.mxu0 %v3608_v8  ;;  %890 = vmatpush1.msra.mxu1 %v3609_v11  ;;  %v3619_v11 = vld [vmem:[#allocation9_spill] sm:$0xff] }
 0x15d   :  { %820 = vmatprep.subr.mxu0 %v3610_v35  ;;  %891 = vmatprep.subr.mxu1 %v3611_v10  ;;  %v3620_v35 = vld [vmem:[#allocation10_spill] sm:$0xff] }
 0x15e   :  { %821 = vmatpush1.msra.mxu0 %v3612_v5  ;;  %892 = vmatpush1.msra.mxu1 %v3613_v19  ;;  %v3621_v5 = vld [vmem:[#allocation31_spill] sm:$0xff] }
 0x15f   :  { %822 = vmatprep.subr.mxu0 %v3614_v53  ;;  %893 = vmatprep.subr.mxu1 %v3615_v9  ;;  %v3622_v53 = vld [vmem:[#allocation33_spill] sm:$0xff] }
 0x160   :  { %823 = vmatpush1.msra.mxu0 %v3616_v6  ;;  %856 = vmatprep.mubr.f32.mxu0 %v3617_v12 }
 0x161   :  { %894 = vmatpush1.msra.mxu1 %v3618_v16  ;;  %927 = vmatprep.mubr.f32.mxu1 %v3617_v12  ;;  %v3624_v12 = vld [vmem:[#allocation34_spill] sm:$0xff] }
 0x162   :  { %969 = vmatprep.subr.mxu0 %v3619_v11  ;;  %1040 = vmatprep.subr.mxu1 %v3620_v35 }
 0x201   :  { %v681_v10 = vpop.f32.mrf.mxu0  ;;  %v752_v6 = vpop.f32.mrf.mxu1 }
 0x202   :  { %v757_v8 = vadd.f32 %v681_v10, %v3621_v5  ;;  %v759_v15 = vadd.f32 %v752_v6, %v3623_v26 }
 0x203   :  { %v683_v19 = vpop.f32.mrf.mxu0  ;;  %v754_v16 = vpop.f32.mrf.mxu1 }
 0x204   :  { %v1983_v13 = vmul.f32 -1.442695, %v757_v8  ;;  %v758_v4 = vadd.f32 %v683_v19, %v3622_v53  ;;  %v1985_v18 = vmul.f32 -1.442695, %v759_v15  ;;  %v760_v0 = vadd.f32 %v754_v16, %v3624_v12 }
 0x206   :  { %2079 = vpow2.f32 %v1983_v13  ;;  %v1984_v9 = vmul.f32 -1.442695, %v758_v4 }
 0x208   :  { %2081 = vpow2.f32 %v1984_v9 }
 0x209   :  { %2083 = vpow2.f32 %v1985_v18 }
 0x20a   :  { %2085 = vtanh.f32 %v760_v0 }
 0x213   :  { %v2080_v11 = vpop.eup %2079 }
 0x214   :  { %v770_v62 = vadd.f32 1.0, %v2080_v11  ;;  %v3647_v11 = vld [vmem:[#allocation36_spill] sm:$0xff] }
 0x215   :  { %v2082_v35 = vpop.eup %2081 }
 0x216   :  { %2087 = vrcp.f32 %v770_v62  ;;  %v771_v10 = vadd.f32 1.0, %v2082_v35  ;;  %v2084_v8 = vpop.eup %2083  ;;  %v3646_v62 = vld [vmem:[#allocation37_spill] sm:$0xff] }
 0x217   :  { %v2086_v5 = vpop.eup %2085  ;;  %v772_v53 = vadd.f32 1.0, %v2084_v8 }
 0x218   :  { %2089 = vrcp.f32 %v771_v10 }
 0x219   :  { %2091 = vrcp.f32 %v772_v53 }
 0x223   :  { %v2088_v13 = vpop.eup %2087 }
 0x224   :  { %v781_v4 = vmul.f32 %v2088_v13, %v2086_v5  ;;  %v3648_v5 = vld [vmem:[#allocation38_spill] sm:$0xff] }
 0x225   :  { %v2090_v19 = vpop.eup %2089 }
 0x226   :  { %v780_v26 = vmul.f32 %v2090_v19, %v2802_v7  ;;  %v2092_v15 = vpop.eup %2091 }
 0x228   :  { %v2876_v9 = vadd.f32 %v781_v4, %v780_v26 }
 0x22a   :  { %2093 = vtanh.f32 %v2876_v9 }
 0x237   :  { %v2094_v18 = vpop.eup %2093 }
 0x238   :  { %v784_v6 = vmul.f32 %v2094_v18, %v2092_v15 }
 0x23a   :  { %857 = vmatmul.mubr.f32.vlgmr.msra.gmra.mxu0 %v784_v6  ;;  %928 = vmatmul.mubr.f32.vlgmr.msra.gmra.mxu1 %v784_v6 }
 0x23b   :  { %970 = vmatpush1.msra.mxu0 %v2400_v20  ;;  %1041 = vmatpush1.msra.mxu1 %v2402_v21  ;;  %v3625_v20 = vld [vmem:[#allocation14_spill] sm:$0xff]  ;;  %v3626_v21 = vld [vmem:[#allocation15_spill] sm:$0xff] }
 0x23c   :  { %971 = vmatprep.subr.mxu0 %v2406_v22  ;;  %1042 = vmatprep.subr.mxu1 %v2408_v23  ;;  %v3627_v22 = vld [vmem:[#allocation16_spill] sm:$0xff]  ;;  %v3628_v23 = vld [vmem:[#allocation17_spill] sm:$0xff] }
 0x23d   :  { %972 = vmatpush1.msra.mxu0 %v2414_v24  ;;  %1043 = vmatpush1.msra.mxu1 %v2416_v25  ;;  %v3629_v24 = vld [vmem:[#allocation18_spill] sm:$0xff]  ;;  %v3630_v25 = vld [vmem:[#allocation19_spill] sm:$0xff] }
 0x23e   :  { %973 = vmatprep.subr.mxu0 %v2425_v27  ;;  %1044 = vmatprep.subr.mxu1 %v2427_v28  ;;  %v3631_v27 = vld [vmem:[#allocation20_spill] sm:$0xff]  ;;  %v3632_v28 = vld [vmem:[#allocation21_spill] sm:$0xff] }
 0x23f   :  { %974 = vmatpush1.msra.mxu0 %v2431_v29  ;;  %1045 = vmatpush1.msra.mxu1 %v2433_v30  ;;  %v3633_v29 = vld [vmem:[#allocation22_spill] sm:$0xff]  ;;  %v3634_v30 = vld [vmem:[#allocation23_spill] sm:$0xff] }
 0x240   :  { %975 = vmatprep.subr.mxu0 %v2437_v31  ;;  %1046 = vmatprep.subr.mxu1 %v2439_v32  ;;  %v3635_v31 = vld [vmem:[#allocation24_spill] sm:$0xff]  ;;  %v3636_v32 = vld [vmem:[#allocation25_spill] sm:$0xff] }
 0x241   :  { %976 = vmatpush1.msra.mxu0 %v2445_v33  ;;  %1047 = vmatpush1.msra.mxu1 %v2447_v34  ;;  %v3637_v33 = vld [vmem:[#allocation26_spill] sm:$0xff]  ;;  %v3638_v34 = vld [vmem:[#allocation27_spill] sm:$0xff] }
 0x242   :  { %977 = vmatprep.subr.mxu0 %v2456_v36  ;;  %1048 = vmatprep.subr.mxu1 %v2458_v37  ;;  %v3639_v36 = vld [vmem:[#allocation28_spill] sm:$0xff]  ;;  %v3640_v37 = vld [vmem:[#allocation29_spill] sm:$0xff] }
 0x243   :  { %978 = vmatpush1.msra.mxu0 %v2462_v38  ;;  %1049 = vmatpush1.msra.mxu1 %v2464_v39  ;;  %v3641_v38 = vmov 0.0   ;;  %v3642_v39 = vld [vmem:[#allocation30_spill] sm:$0xff] }
 0x244   :  { %979 = vmatprep.subr.mxu0 %v2468_v40  ;;  %1050 = vmatprep.subr.mxu1 %v2470_v41  ;;  %v2943_v40 = vld [vmem:[#allocation3 + $0x1e8] sm:$0xff]  ;;  %v2946_v41 = vld [vmem:[#allocation3 + $0x1f8] sm:$0xff] }
 0x245   :  { %980 = vmatpush1.msra.mxu0 %v2476_v42  ;;  %1051 = vmatpush1.msra.mxu1 %v2478_v43  ;;  %3643 = vst [vmem:[#allocation11_spill] sm:$0xff] %v2943_v40  ;;  %3644 = vst [vmem:[#allocation12_spill] sm:$0xff] %v2946_v41  ;;  %v3645_v43 = vld [vmem:[#allocation35_spill] sm:$0xff] }
 0x246   :  { %981 = vmatprep.subr.mxu0 %v2487_v45  ;;  %1052 = vmatprep.subr.mxu1 %v2489_v46 }
 0x247   :  { %982 = vmatpush1.msra.mxu0 %v2493_v47  ;;  %1053 = vmatpush1.msra.mxu1 %v2495_v48 }
 0x248   :  { %983 = vmatprep.subr.mxu0 %v2499_v49  ;;  %1054 = vmatprep.subr.mxu1 %v2501_v50 }
 0x249   :  { %984 = vmatpush1.msra.mxu0 %v2507_v51  ;;  %1055 = vmatpush1.msra.mxu1 %v2509_v52 }
 0x24a   :  { %985 = vmatprep.subr.mxu0 %v2518_v54  ;;  %1056 = vmatprep.subr.mxu1 %v2520_v55 }
 0x24b   :  { %986 = vmatpush1.msra.mxu0 %v2524_v56  ;;  %1057 = vmatpush1.msra.mxu1 %v2526_v57 }
 0x24c   :  { %987 = vmatprep.subr.mxu0 %v2530_v58  ;;  %1058 = vmatprep.subr.mxu1 %v2532_v59 }
 0x24d   :  { %988 = vmatpush1.msra.mxu0 %v2538_v60  ;;  %1059 = vmatpush1.msra.mxu1 %v2540_v61 }
 0x24e   :  { %989 = vmatprep.subr.mxu0 %v2549_v63  ;;  %1060 = vmatprep.subr.mxu1 %v2551_v1 }
 0x24f   :  { %990 = vmatpush1.msra.mxu0 %v2555_v2  ;;  %1061 = vmatpush1.msra.mxu1 %v2557_v3 }
 0x250   :  { %991 = vmatprep.subr.mxu0 %v3598_v17  ;;  %1062 = vmatprep.subr.mxu1 %v3599_v14 }
 0x251   :  { %992 = vmatpush1.msra.mxu0 %v3600_v44  ;;  %1063 = vmatpush1.msra.mxu1 %v3625_v20 }
 0x252   :  { %993 = vmatprep.subr.mxu0 %v3626_v21  ;;  %1064 = vmatprep.subr.mxu1 %v3627_v22 }
 0x253   :  { %994 = vmatpush1.msra.mxu0 %v3628_v23  ;;  %1065 = vmatpush1.msra.mxu1 %v3629_v24 }
 0x254   :  { %995 = vmatprep.subr.mxu0 %v3630_v25  ;;  %1066 = vmatprep.subr.mxu1 %v3631_v27 }
 0x255   :  { %996 = vmatpush1.msra.mxu0 %v3632_v28  ;;  %1067 = vmatpush1.msra.mxu1 %v3633_v29 }
 0x256   :  { %997 = vmatprep.subr.mxu0 %v3634_v30  ;;  %1068 = vmatprep.subr.mxu1 %v3635_v31 }
 0x257   :  { %998 = vmatpush1.msra.mxu0 %v3636_v32  ;;  %1069 = vmatpush1.msra.mxu1 %v3637_v33 }
 0x258   :  { %999 = vmatprep.subr.mxu0 %v3638_v34  ;;  %1070 = vmatprep.subr.mxu1 %v3639_v36 }
 0x259   :  { %1000 = vmatpush1.msra.mxu0 %v3640_v37  ;;  %1033 = vmatprep.mubr.f32.mxu0 %v3641_v38 }
 0x25a   :  { %1071 = vmatpush1.msra.mxu1 %v3642_v39  ;;  %1104 = vmatprep.mubr.f32.mxu1 %v3641_v38 }
 0x25b   :  { %1146 = vmatprep.subr.mxu0 %v2943_v40  ;;  %1217 = vmatprep.subr.mxu1 %v2946_v41 }
 0x2fa   :  { %v858_v42 = vpop.f32.mrf.mxu0  ;;  %v929_v16 = vpop.f32.mrf.mxu1 }
 0x2fb   :  { %v934_v45 = vadd.f32 %v858_v42, %v3645_v43  ;;  %v936_v35 = vadd.f32 %v929_v16, %v3647_v11  ;;  %v2957_v16 = vld [vmem:[#allocation3 + $0x1e0] sm:$0xff]  ;;  %v2960_v11 = vld [vmem:[#allocation3 + $0x1f0] sm:$0xff] }
 0x2fc   :  { %v860_v46 = vpop.f32.mrf.mxu0  ;;  %v931_v10 = vpop.f32.mrf.mxu1 }
 0x2fd   :  { %v1986_v7 = vmul.f32 -1.442695, %v934_v45  ;;  %v935_v0 = vadd.f32 %v860_v46, %v3646_v62  ;;  %v1988_v8 = vmul.f32 -1.442695, %v936_v35  ;;  %v937_v13 = vadd.f32 %v931_v10, %v3648_v5  ;;  %v2963_v35 = vld [vmem:[#allocation3 + $0x1c8] sm:$0xff]  ;;  %v2969_v10 = vld [vmem:[#allocation3 + $0x1c0] sm:$0xff] }
 0x2fe   :  { %v2975_v5 = vld [vmem:[#allocation3 + $0x1a8] sm:$0xff] }
 0x2ff   :  { %2095 = vpow2.f32 %v1986_v7  ;;  %v1987_v12 = vmul.f32 -1.442695, %v935_v0 }
 0x301   :  { %2097 = vpow2.f32 %v1987_v12 }
 0x302   :  { %2099 = vpow2.f32 %v1988_v8  ;;  %v2972_v8 = vld [vmem:[#allocation3 + $0x1d0] sm:$0xff] }
 0x303   :  { %2101 = vtanh.f32 %v937_v13  ;;  %v2978_v13 = vld [vmem:[#allocation3 + $0x1b8] sm:$0xff] }
 0x30c   :  { %v2096_v4 = vpop.eup %2095 }
 0x30d   :  { %v947_v19 = vadd.f32 1.0, %v2096_v4  ;;  %v2981_v4 = vld [vmem:[#allocation3 + $0x1a0] sm:$0xff] }
 0x30e   :  { %v2098_v53 = vpop.eup %2097 }
 0x30f   :  { %2103 = vrcp.f32 %v947_v19  ;;  %v948_v26 = vadd.f32 1.0, %v2098_v53  ;;  %v2100_v15 = vpop.eup %2099  ;;  %v2984_v19 = vld [vmem:[#allocation3 + $0x1b0] sm:$0xff]  ;;  %v2987_v53 = vld [vmem:[#allocation3 + $0x188] sm:$0xff] }
 0x310   :  { %v2102_v18 = vpop.eup %2101  ;;  %v949_v45 = vadd.f32 1.0, %v2100_v15  ;;  %v2993_v15 = vld [vmem:[#allocation3 + $0x180] sm:$0xff] }
 0x311   :  { %2105 = vrcp.f32 %v948_v26  ;;  %v2990_v26 = vld [vmem:[#allocation3 + $0x198] sm:$0xff] }
 0x312   :  { %2107 = vrcp.f32 %v949_v45  ;;  %v3008_v45 = vld [vmem:[#allocation3 + $0x170] sm:$0xff] }
 0x313   :  { %3650 = vst [vmem:[#allocation9_spill] sm:$0xff] %v3008_v45 }
 0x31c   :  { %v2104_v6 = vpop.eup %2103 }
 0x31d   :  { %v958_v42 = vmul.f32 %v2104_v6, %v2102_v18  ;;  %v2996_v18 = vld [vmem:[#allocation3 + $0x190] sm:$0xff]  ;;  %v2999_v6 = vld [vmem:[#allocation3 + $0x168] sm:$0xff] }
 0x31e   :  { %v2106_v43 = vpop.eup %2105 }
 0x31f   :  { %v957_v46 = vmul.f32 %v2106_v43, %v2876_v9  ;;  %v2108_v62 = vpop.eup %2107  ;;  %v2966_v9 = vld [vmem:[#allocation3 + $0x1d8] sm:$0xff]  ;;  %v3005_v43 = vld [vmem:[#allocation3 + $0x160] sm:$0xff] }
 0x320   :  { %3649 = vst [vmem:[#allocation13_spill] sm:$0xff] %v3005_v43 }
 0x321   :  { %v2954_v7 = vadd.f32 %v958_v42, %v957_v46  ;;  %v3002_v42 = vld [vmem:[#allocation3 + $0x178] sm:$0xff]  ;;  %v3011_v46 = vld [vmem:[#allocation3 + $0x148] sm:$0xff] }
 0x323   :  { %2109 = vtanh.f32 %v2954_v7 }
 0x330   :  { %v2110_v0 = vpop.eup %2109 }
 0x331   :  { %v961_v12 = vmul.f32 %v2110_v0, %v2108_v62  ;;  %v3014_v62 = vld [vmem:[#allocation3 + $0x158] sm:$0xff]  ;;  %v3017_v0 = vld [vmem:[#allocation3 + $0x140] sm:$0xff] }
 0x333   :  { %1034 = vmatmul.mubr.f32.vlgmr.msra.gmra.mxu0 %v961_v12  ;;  %1105 = vmatmul.mubr.f32.vlgmr.msra.gmra.mxu1 %v961_v12  ;;  %v3020_v12 = vld [vmem:[#allocation3 + $0x150] sm:$0xff] }
 0x334   :  { %1147 = vmatpush1.msra.mxu0 %v2957_v16  ;;  %1218 = vmatpush1.msra.mxu1 %v2960_v11 }
 0x335   :  { %1148 = vmatprep.subr.mxu0 %v2963_v35  ;;  %1219 = vmatprep.subr.mxu1 %v2966_v9 }
 0x336   :  { %1149 = vmatpush1.msra.mxu0 %v2969_v10  ;;  %1220 = vmatpush1.msra.mxu1 %v2972_v8 }
 0x337   :  { %1150 = vmatprep.subr.mxu0 %v2975_v5  ;;  %1221 = vmatprep.subr.mxu1 %v2978_v13 }
 0x338   :  { %1151 = vmatpush1.msra.mxu0 %v2981_v4  ;;  %1222 = vmatpush1.msra.mxu1 %v2984_v19 }
 0x339   :  { %1152 = vmatprep.subr.mxu0 %v2987_v53  ;;  %1223 = vmatprep.subr.mxu1 %v2990_v26 }
 0x33a   :  { %1153 = vmatpush1.msra.mxu0 %v2993_v15  ;;  %1224 = vmatpush1.msra.mxu1 %v2996_v18 }
 0x33b   :  { %1154 = vmatprep.subr.mxu0 %v2999_v6  ;;  %1225 = vmatprep.subr.mxu1 %v3002_v42 }
 0x33c   :  { %1155 = vmatpush1.msra.mxu0 %v3005_v43  ;;  %1226 = vmatpush1.msra.mxu1 %v3008_v45  ;;  %v3023_v43 = vld [vmem:[#allocation3 + $0x128] sm:$0xff]  ;;  %v3026_v45 = vld [vmem:[#allocation3 + $0x138] sm:$0xff] }
 0x33d   :  { %1156 = vmatprep.subr.mxu0 %v3011_v46  ;;  %1227 = vmatprep.subr.mxu1 %v3014_v62 }
 0x33e   :  { %1157 = vmatpush1.msra.mxu0 %v3017_v0  ;;  %1228 = vmatpush1.msra.mxu1 %v3020_v12 }
 0x33f   :  { %1158 = vmatprep.subr.mxu0 %v3023_v43  ;;  %1229 = vmatprep.subr.mxu1 %v3026_v45 }
 0x340   :  { %1159 = vmatpush1.msra.mxu0 %v2493_v47  ;;  %1230 = vmatpush1.msra.mxu1 %v2495_v48  ;;  %v3651_v48 = vld [vmem:[#allocation39_spill] sm:$0xff] }
 0x341   :  { %1160 = vmatprep.subr.mxu0 %v2499_v49  ;;  %1231 = vmatprep.subr.mxu1 %v2501_v50 }
 0x342   :  { %1161 = vmatpush1.msra.mxu0 %v2507_v51  ;;  %1232 = vmatpush1.msra.mxu1 %v2509_v52  ;;  %v3652_v52 = vld [vmem:[#allocation41_spill] sm:$0xff] }
 0x343   :  { %1162 = vmatprep.subr.mxu0 %v2518_v54  ;;  %1233 = vmatprep.subr.mxu1 %v2520_v55 }
 0x344   :  { %1163 = vmatpush1.msra.mxu0 %v2524_v56  ;;  %1234 = vmatpush1.msra.mxu1 %v2526_v57  ;;  %v3653_v57 = vld [vmem:[#allocation40_spill] sm:$0xff] }
 0x345   :  { %1164 = vmatprep.subr.mxu0 %v2530_v58  ;;  %1235 = vmatprep.subr.mxu1 %v2532_v59 }
 0x346   :  { %1165 = vmatpush1.msra.mxu0 %v2538_v60  ;;  %1236 = vmatpush1.msra.mxu1 %v2540_v61  ;;  %v3654_v61 = vld [vmem:[#allocation42_spill] sm:$0xff] }
 0x347   :  { %1166 = vmatprep.subr.mxu0 %v2549_v63  ;;  %1237 = vmatprep.subr.mxu1 %v2551_v1 }
 0x348   :  { %1167 = vmatpush1.msra.mxu0 %v2555_v2  ;;  %1238 = vmatpush1.msra.mxu1 %v2557_v3 }
 0x349   :  { %1168 = vmatprep.subr.mxu0 %v3598_v17  ;;  %1239 = vmatprep.subr.mxu1 %v3599_v14 }
 0x34a   :  { %1169 = vmatpush1.msra.mxu0 %v3600_v44  ;;  %1240 = vmatpush1.msra.mxu1 %v3625_v20 }
 0x34b   :  { %1170 = vmatprep.subr.mxu0 %v3626_v21  ;;  %1241 = vmatprep.subr.mxu1 %v3627_v22 }
 0x34c   :  { %1171 = vmatpush1.msra.mxu0 %v3628_v23  ;;  %1242 = vmatpush1.msra.mxu1 %v3629_v24 }
 0x34d   :  { %1172 = vmatprep.subr.mxu0 %v3630_v25  ;;  %1243 = vmatprep.subr.mxu1 %v3631_v27 }
 0x34e   :  { %1173 = vmatpush1.msra.mxu0 %v3632_v28  ;;  %1244 = vmatpush1.msra.mxu1 %v3633_v29 }
 0x34f   :  { %1174 = vmatprep.subr.mxu0 %v3634_v30  ;;  %1245 = vmatprep.subr.mxu1 %v3635_v31  ;;  %v3655_v30 = vld [vmem:[#allocation13_spill] sm:$0xff] }
 0x350   :  { %1175 = vmatpush1.msra.mxu0 %v3636_v32  ;;  %1246 = vmatpush1.msra.mxu1 %v3637_v33  ;;  %v3656_v31 = vld [vmem:[#allocation9_spill] sm:$0xff]  ;;  %v3103_v32 = vld [vmem:[#allocation3 + $0x120] sm:$0xff]  ;;  %v3106_v33 = vld [vmem:[#allocation3 + $0x130] sm:$0xff] }
 0x351   :  { %1176 = vmatprep.subr.mxu0 %v3638_v34  ;;  %1247 = vmatprep.subr.mxu1 %v3639_v36  ;;  %v3109_v34 = vld [vmem:[#allocation3 + $0x108] sm:$0xff]  ;;  %v3112_v36 = vld [vmem:[#allocation3 + $0x118] sm:$0xff] }
 0x352   :  { %1177 = vmatpush1.msra.mxu0 %v3640_v37  ;;  %1210 = vmatprep.mubr.f32.mxu0 %v3641_v38  ;;  %v3115_v37 = vld [vmem:[#allocation3 + $0x100] sm:$0xff] }
 0x353   :  { %1248 = vmatpush1.msra.mxu1 %v3642_v39  ;;  %1281 = vmatprep.mubr.f32.mxu1 %v3641_v38  ;;  %v3118_v39 = vld [vmem:[#allocation3 + $0x110] sm:$0xff] }
 0x354   :  { %1323 = vmatprep.subr.mxu0 %v2943_v40  ;;  %1394 = vmatprep.subr.mxu1 %v2946_v41 }
 0x3f3   :  { %v1035_v47 = vpop.f32.mrf.mxu0  ;;  %v1106_v56 = vpop.f32.mrf.mxu1 }
 0x3f4   :  { %v1111_v49 = vadd.f32 %v1035_v47, %v3651_v48  ;;  %v1113_v58 = vadd.f32 %v1106_v56, %v3653_v57  ;;  %v3124_v47 = vld [vmem:[#allocation3 + $0xf8] sm:$0xff]  ;;  %v3127_v48 = vld [vmem:[#allocation3 + $0xe0] sm:$0xff] }
 0x3f5   :  { %v1037_v50 = vpop.f32.mrf.mxu0  ;;  %v1108_v59 = vpop.f32.mrf.mxu1  ;;  %v3148_v56 = vld [vmem:[#allocation3 + $0xb8] sm:$0xff]  ;;  %v3151_v57 = vld [vmem:[#allocation3 + $0xa0] sm:$0xff] }
 0x3f6   :  { %v1989_v51 = vmul.f32 -1.442695, %v1111_v49  ;;  %v1112_v54 = vadd.f32 %v1037_v50, %v3652_v52  ;;  %v1991_v60 = vmul.f32 -1.442695, %v1113_v58  ;;  %v1114_v63 = vadd.f32 %v1108_v59, %v3654_v61  ;;  %v3130_v49 = vld [vmem:[#allocation3 + $0xf0] sm:$0xff]  ;;  %v3133_v50 = vld [vmem:[#allocation3 + $0xc8] sm:$0xff] }
 0x3f7   :  { %v3139_v52 = vld [vmem:[#allocation3 + $0xc0] sm:$0xff]  ;;  %v3154_v58 = vld [vmem:[#allocation3 + $0xb0] sm:$0xff]  ;;  %v3157_v59 = vld [vmem:[#allocation3 + $0x88] sm:$0xff] }
 0x3f8   :  { %2111 = vpow2.f32 %v1989_v51  ;;  %v1990_v55 = vmul.f32 -1.442695, %v1112_v54  ;;  %v3136_v51 = vld [vmem:[#allocation3 + $0xd8] sm:$0xff]  ;;  %v3142_v54 = vld [vmem:[#allocation3 + $0xd0] sm:$0xff]  ;;  %v3163_v61 = vld [vmem:[#allocation3 + $0x80] sm:$0xff] }
 0x3fa   :  { %2113 = vpow2.f32 %v1990_v55  ;;  %v3145_v55 = vld [vmem:[#allocation3 + $0xa8] sm:$0xff] }
 0x3fb   :  { %2115 = vpow2.f32 %v1991_v60  ;;  %v3160_v60 = vld [vmem:[#allocation3 + $0x98] sm:$0xff] }
 0x3fc   :  { %2117 = vtanh.f32 %v1114_v63  ;;  %v3166_v63 = vld [vmem:[#allocation3 + $0x90] sm:$0xff] }
 0x3fd   :  { %3657 = vst [vmem:[#allocation10_spill] sm:$0xff] %v3166_v63 }
 0x405   :  { %v2112_v1 = vpop.eup %2111 }
 0x406   :  { %v1124_v2 = vadd.f32 1.0, %v2112_v1  ;;  %v3169_v1 = vld [vmem:[#allocation3 + $0x68] sm:$0xff] }
 0x407   :  { %v2114_v3 = vpop.eup %2113  ;;  %3658 = vst [vmem:[#allocation31_spill] sm:$0xff] %v3169_v1 }
 0x408   :  { %2119 = vrcp.f32 %v1124_v2  ;;  %v1125_v17 = vadd.f32 1.0, %v2114_v3  ;;  %v2116_v14 = vpop.eup %2115  ;;  %v3172_v2 = vld [vmem:[#allocation3 + $0x78] sm:$0xff]  ;;  %v3175_v3 = vld [vmem:[#allocation3 + $0x60] sm:$0xff] }
 0x409   :  { %v2118_v44 = vpop.eup %2117  ;;  %v1126_v23 = vadd.f32 1.0, %v2116_v14  ;;  %3659 = vst [vmem:[#allocation33_spill] sm:$0xff] %v3172_v2  ;;  %3660 = vst [vmem:[#allocation32_spill] sm:$0xff] %v3175_v3  ;;  %v3181_v14 = vld [vmem:[#allocation3 + $0x48] sm:$0xff] }
 0x40a   :  { %2121 = vrcp.f32 %v1125_v17  ;;  %v3178_v17 = vld [vmem:[#allocation3 + $0x70] sm:$0xff]  ;;  %3662 = vst [vmem:[#allocation14_spill] sm:$0xff] %v3181_v14 }
 0x40b   :  { %2123 = vrcp.f32 %v1126_v23  ;;  %3661 = vst [vmem:[#allocation34_spill] sm:$0xff] %v3178_v17  ;;  %v3196_v23 = vld [vmem:[#allocation3 + $0x38] sm:$0xff] }
 0x40c   :  { %3667 = vst [vmem:[#allocation19_spill] sm:$0xff] %v3196_v23 }
 0x415   :  { %v2120_v20 = vpop.eup %2119 }
 0x416   :  { %v1135_v21 = vmul.f32 %v2120_v20, %v2118_v44  ;;  %v3184_v44 = vld [vmem:[#allocation3 + $0x58] sm:$0xff]  ;;  %v3187_v20 = vld [vmem:[#allocation3 + $0x40] sm:$0xff] }
 0x417   :  { %v2122_v22 = vpop.eup %2121  ;;  %3663 = vst [vmem:[#allocation15_spill] sm:$0xff] %v3184_v44  ;;  %3664 = vst [vmem:[#allocation16_spill] sm:$0xff] %v3187_v20 }
 0x418   :  { %v1134_v24 = vmul.f32 %v2122_v22, %v2954_v7  ;;  %v2124_v27 = vpop.eup %2123  ;;  %v3121_v7 = vld [vmem:[#allocation3 + $0xe8] sm:$0xff] }
 0x419   :  { %v3193_v22 = vld [vmem:[#allocation3 + $0x28] sm:$0xff] }
 0x41a   :  { %v3076_v25 = vadd.f32 %v1135_v21, %v1134_v24  ;;  %v3190_v21 = vld [vmem:[#allocation3 + $0x50] sm:$0xff]  ;;  %3666 = vst [vmem:[#allocation18_spill] sm:$0xff] %v3193_v22  ;;  %v3199_v24 = vld [vmem:[#allocation3 + $0x20] sm:$0xff] }
 0x41b   :  { %3665 = vst [vmem:[#allocation17_spill] sm:$0xff] %v3190_v21  ;;  %3668 = vst [vmem:[#allocation20_spill] sm:$0xff] %v3199_v24 }
 0x41c   :  { %2125 = vtanh.f32 %v3076_v25 }
 0x429   :  { %v2126_v28 = vpop.eup %2125 }
 0x42a   :  { %v1138_v29 = vmul.f32 %v2126_v28, %v2124_v27  ;;  %v3202_v27 = vld [vmem:[#allocation3 + $0x30] sm:$0xff]  ;;  %v3205_v28 = vld [vmem:[#allocation3 + $0x8] sm:$0xff] }
 0x42b   :  { %3669 = vst [vmem:[#allocation21_spill] sm:$0xff] %v3202_v27  ;;  %3670 = vst [vmem:[#allocation22_spill] sm:$0xff] %v3205_v28 }
 0x42c   :  { %1211 = vmatmul.mubr.f32.vlgmr.msra.gmra.mxu0 %v1138_v29  ;;  %1282 = vmatmul.mubr.f32.vlgmr.msra.gmra.mxu1 %v1138_v29  ;;  %v3208_v29 = vld [vmem:[#allocation3 + $0x18] sm:$0xff] }
 0x42d   :  { %1324 = vmatpush1.msra.mxu0 %v2957_v16  ;;  %1395 = vmatpush1.msra.mxu1 %v2960_v11  ;;  %3671 = vst [vmem:[#allocation23_spill] sm:$0xff] %v3208_v29 }
 0x42e   :  { %1325 = vmatprep.subr.mxu0 %v2963_v35  ;;  %1396 = vmatprep.subr.mxu1 %v2966_v9 }
 0x42f   :  { %1326 = vmatpush1.msra.mxu0 %v2969_v10  ;;  %1397 = vmatpush1.msra.mxu1 %v2972_v8 }
 0x430   :  { %1327 = vmatprep.subr.mxu0 %v2975_v5  ;;  %1398 = vmatprep.subr.mxu1 %v2978_v13 }
 0x431   :  { %1328 = vmatpush1.msra.mxu0 %v2981_v4  ;;  %1399 = vmatpush1.msra.mxu1 %v2984_v19 }
 0x432   :  { %1329 = vmatprep.subr.mxu0 %v2987_v53  ;;  %1400 = vmatprep.subr.mxu1 %v2990_v26 }
 0x433   :  { %1330 = vmatpush1.msra.mxu0 %v2993_v15  ;;  %1401 = vmatpush1.msra.mxu1 %v2996_v18 }
 0x434   :  { %1331 = vmatprep.subr.mxu0 %v2999_v6  ;;  %1402 = vmatprep.subr.mxu1 %v3002_v42 }
 0x435   :  { %1332 = vmatpush1.msra.mxu0 %v3655_v30  ;;  %1403 = vmatpush1.msra.mxu1 %v3656_v31 }
 0x436   :  { %1333 = vmatprep.subr.mxu0 %v3011_v46  ;;  %1404 = vmatprep.subr.mxu1 %v3014_v62 }
 0x437   :  { %1334 = vmatpush1.msra.mxu0 %v3017_v0  ;;  %1405 = vmatpush1.msra.mxu1 %v3020_v12 }
 0x438   :  { %1335 = vmatprep.subr.mxu0 %v3023_v43  ;;  %1406 = vmatprep.subr.mxu1 %v3026_v45 }
 0x439   :  { %1336 = vmatpush1.msra.mxu0 %v3103_v32  ;;  %1407 = vmatpush1.msra.mxu1 %v3106_v33 }
 0x43a   :  { %1337 = vmatprep.subr.mxu0 %v3109_v34  ;;  %1408 = vmatprep.subr.mxu1 %v3112_v36 }
 0x43b   :  { %1338 = vmatpush1.msra.mxu0 %v3115_v37  ;;  %1409 = vmatpush1.msra.mxu1 %v3118_v39 }
 0x43c   :  { %1339 = vmatprep.subr.mxu0 %v3121_v7  ;;  %1410 = vmatprep.subr.mxu1 %v3124_v47 }
 0x43d   :  { %1340 = vmatpush1.msra.mxu0 %v3127_v48  ;;  %1411 = vmatpush1.msra.mxu1 %v3130_v49 }
 0x43e   :  { %1341 = vmatprep.subr.mxu0 %v3133_v50  ;;  %1412 = vmatprep.subr.mxu1 %v3136_v51 }
 0x43f   :  { %1342 = vmatpush1.msra.mxu0 %v3139_v52  ;;  %1413 = vmatpush1.msra.mxu1 %v3142_v54 }
 0x440   :  { %1343 = vmatprep.subr.mxu0 %v3145_v55  ;;  %1414 = vmatprep.subr.mxu1 %v3148_v56 }
 0x441   :  { %1344 = vmatpush1.msra.mxu0 %v3151_v57  ;;  %1415 = vmatpush1.msra.mxu1 %v3154_v58 }
 0x442   :  { %1345 = vmatprep.subr.mxu0 %v3157_v59  ;;  %1416 = vmatprep.subr.mxu1 %v3160_v60 }
 0x443   :  { %1346 = vmatpush1.msra.mxu0 %v3163_v61  ;;  %1417 = vmatpush1.msra.mxu1 %v3166_v63 }
 0x444   :  { %1347 = vmatprep.subr.mxu0 %v3169_v1  ;;  %1418 = vmatprep.subr.mxu1 %v3172_v2 }
 0x445   :  { %1348 = vmatpush1.msra.mxu0 %v3175_v3  ;;  %1419 = vmatpush1.msra.mxu1 %v3178_v17  ;;  %v3676_v17 = vld [vmem:[#allocation44_spill] sm:$0xff] }
 0x446   :  { %1349 = vmatprep.subr.mxu0 %v3181_v14  ;;  %1420 = vmatprep.subr.mxu1 %v3184_v44 }
 0x447   :  { %1350 = vmatpush1.msra.mxu0 %v3187_v20  ;;  %1421 = vmatpush1.msra.mxu1 %v3190_v21  ;;  %v3675_v20 = vld [vmem:[#allocation45_spill] sm:$0xff] }
 0x448   :  { %1351 = vmatprep.subr.mxu0 %v3193_v22  ;;  %1422 = vmatprep.subr.mxu1 %v3196_v23  ;;  %v3211_v22 = vld [vmem:[#allocation3] sm:$0xff]  ;;  %v3215_v23 = vld [vmem:[#allocation3 + $0x10] sm:$0xff] }
 0x449   :  { %1352 = vmatpush1.msra.mxu0 %v3199_v24  ;;  %1423 = vmatpush1.msra.mxu1 %v3202_v27  ;;  %3672 = vst [vmem:[#allocation24_spill] sm:$0xff] %v3211_v22  ;;  %3673 = vst [vmem:[#allocation25_spill] sm:$0xff] %v3215_v23  ;;  %v3674_v27 = vld [vmem:[#allocation43_spill] sm:$0xff] }
 0x44a   :  { %1353 = vmatprep.subr.mxu0 %v3205_v28  ;;  %1424 = vmatprep.subr.mxu1 %v3208_v29 }
 0x44b   :  { %1354 = vmatpush1.msra.mxu0 %v3211_v22  ;;  %1387 = vmatprep.mubr.f32.mxu0 %v3641_v38 }
 0x44c   :  { %1425 = vmatpush1.msra.mxu1 %v3215_v23  ;;  %1458 = vmatprep.mubr.f32.mxu1 %v3641_v38  ;;  %v3677_v38 = vld [vmem:[#allocation46_spill] sm:$0xff] }
 0x44d   :  { %1500 = vmatprep.subr.mxu0 %v2943_v40  ;;  %1571 = vmatprep.subr.mxu1 %v2946_v41 }
 0x4ec   :  { %v1212_v28 = vpop.f32.mrf.mxu0  ;;  %v1283_v14 = vpop.f32.mrf.mxu1 }
 0x4ed   :  { %v1288_v24 = vadd.f32 %v1212_v28, %v3674_v27  ;;  %v1290_v3 = vadd.f32 %v1283_v14, %v3676_v17 }
 0x4ee   :  { %v1214_v29 = vpop.f32.mrf.mxu0  ;;  %v1285_v23 = vpop.f32.mrf.mxu1 }
 0x4ef   :  { %v1992_v21 = vmul.f32 -1.442695, %v1288_v24  ;;  %v1289_v44 = vadd.f32 %v1214_v29, %v3675_v20  ;;  %v1994_v2 = vmul.f32 -1.442695, %v1290_v3  ;;  %v1291_v1 = vadd.f32 %v1285_v23, %v3677_v38  ;;  %v3682_v3 = vld [vmem:[#allocation34_spill] sm:$0xff]  ;;  %v3684_v29 = vld [vmem:[#allocation15_spill] sm:$0xff] }
 0x4f0   :  { %v3683_v23 = vld [vmem:[#allocation14_spill] sm:$0xff] }
 0x4f1   :  { %2127 = vpow2.f32 %v1992_v21  ;;  %v1993_v22 = vmul.f32 -1.442695, %v1289_v44 }
 0x4f3   :  { %2129 = vpow2.f32 %v1993_v22 }
 0x4f4   :  { %2131 = vpow2.f32 %v1994_v2 }
 0x4f5   :  { %2133 = vtanh.f32 %v1291_v1  ;;  %v3681_v1 = vld [vmem:[#allocation32_spill] sm:$0xff] }
 0x4fe   :  { %v2128_v40 = vpop.eup %2127 }
 0x4ff   :  { %v1301_v63 = vadd.f32 1.0, %v2128_v40 }
 0x500   :  { %v2130_v41 = vpop.eup %2129 }
 0x501   :  { %2135 = vrcp.f32 %v1301_v63  ;;  %v1302_v27 = vadd.f32 1.0, %v2130_v41  ;;  %v2132_v24 = vpop.eup %2131  ;;  %v3678_v41 = vld [vmem:[#allocation10_spill] sm:$0xff]  ;;  %v3680_v63 = vld [vmem:[#allocation33_spill] sm:$0xff] }
 0x502   :  { %v2134_v20 = vpop.eup %2133  ;;  %v1303_v28 = vadd.f32 1.0, %v2132_v24  ;;  %v3686_v24 = vld [vmem:[#allocation17_spill] sm:$0xff] }
 0x503   :  { %2137 = vrcp.f32 %v1302_v27  ;;  %v3685_v27 = vld [vmem:[#allocation16_spill] sm:$0xff] }
 0x504   :  { %2139 = vrcp.f32 %v1303_v28  ;;  %v3691_v28 = vld [vmem:[#allocation22_spill] sm:$0xff] }
 0x50e   :  { %v2136_v21 = vpop.eup %2135 }
 0x50f   :  { %v1312_v44 = vmul.f32 %v2136_v21, %v2134_v20  ;;  %v3687_v20 = vld [vmem:[#allocation18_spill] sm:$0xff]  ;;  %v3688_v21 = vld [vmem:[#allocation19_spill] sm:$0xff] }
 0x510   :  { %v2138_v22 = vpop.eup %2137 }
 0x511   :  { %v1311_v17 = vmul.f32 %v2138_v22, %v3076_v25  ;;  %v2140_v38 = vpop.eup %2139  ;;  %v3679_v25 = vld [vmem:[#allocation31_spill] sm:$0xff]  ;;  %v3690_v22 = vld [vmem:[#allocation21_spill] sm:$0xff] }
 0x513   :  { %v3226_v14 = vadd.f32 %v1312_v44, %v1311_v17  ;;  %v3689_v44 = vld [vmem:[#allocation20_spill] sm:$0xff]  ;;  %v3692_v17 = vld [vmem:[#allocation23_spill] sm:$0xff] }
 0x515   :  { %2141 = vtanh.f32 %v3226_v14 }
 0x522   :  { %v2142_v40 = vpop.eup %2141 }
 0x523   :  { %v1315_v2 = vmul.f32 %v2142_v40, %v2140_v38  ;;  %v3693_v38 = vld [vmem:[#allocation24_spill] sm:$0xff]  ;;  %v3694_v40 = vmov 0.0  }
 0x525   :  { %1388 = vmatmul.mubr.f32.vlgmr.msra.gmra.mxu0 %v1315_v2  ;;  %1459 = vmatmul.mubr.f32.vlgmr.msra.gmra.mxu1 %v1315_v2  ;;  %v3695_v2 = vld [vmem:[#allocation25_spill] sm:$0xff] }
 0x526   :  { %1501 = vmatpush1.msra.mxu0 %v2957_v16  ;;  %1572 = vmatpush1.msra.mxu1 %v2960_v11 }
 0x527   :  { %1502 = vmatprep.subr.mxu0 %v2963_v35  ;;  %1573 = vmatprep.subr.mxu1 %v2966_v9 }
 0x528   :  { %1503 = vmatpush1.msra.mxu0 %v2969_v10  ;;  %1574 = vmatpush1.msra.mxu1 %v2972_v8 }
 0x529   :  { %1504 = vmatprep.subr.mxu0 %v2975_v5  ;;  %1575 = vmatprep.subr.mxu1 %v2978_v13 }
 0x52a   :  { %1505 = vmatpush1.msra.mxu0 %v2981_v4  ;;  %1576 = vmatpush1.msra.mxu1 %v2984_v19 }
 0x52b   :  { %1506 = vmatprep.subr.mxu0 %v2987_v53  ;;  %1577 = vmatprep.subr.mxu1 %v2990_v26 }
 0x52c   :  { %1507 = vmatpush1.msra.mxu0 %v2993_v15  ;;  %1578 = vmatpush1.msra.mxu1 %v2996_v18 }
 0x52d   :  { %1508 = vmatprep.subr.mxu0 %v2999_v6  ;;  %1579 = vmatprep.subr.mxu1 %v3002_v42 }
 0x52e   :  { %1509 = vmatpush1.msra.mxu0 %v3655_v30  ;;  %1580 = vmatpush1.msra.mxu1 %v3656_v31 }
 0x52f   :  { %1510 = vmatprep.subr.mxu0 %v3011_v46  ;;  %1581 = vmatprep.subr.mxu1 %v3014_v62 }
 0x530   :  { %1511 = vmatpush1.msra.mxu0 %v3017_v0  ;;  %1582 = vmatpush1.msra.mxu1 %v3020_v12 }
 0x531   :  { %1512 = vmatprep.subr.mxu0 %v3023_v43  ;;  %1583 = vmatprep.subr.mxu1 %v3026_v45 }
 0x532   :  { %1513 = vmatpush1.msra.mxu0 %v3103_v32  ;;  %1584 = vmatpush1.msra.mxu1 %v3106_v33 }
 0x533   :  { %1514 = vmatprep.subr.mxu0 %v3109_v34  ;;  %1585 = vmatprep.subr.mxu1 %v3112_v36 }
 0x534   :  { %1515 = vmatpush1.msra.mxu0 %v3115_v37  ;;  %1586 = vmatpush1.msra.mxu1 %v3118_v39 }
 0x535   :  { %1516 = vmatprep.subr.mxu0 %v3121_v7  ;;  %1587 = vmatprep.subr.mxu1 %v3124_v47 }
 0x536   :  { %1517 = vmatpush1.msra.mxu0 %v3127_v48  ;;  %1588 = vmatpush1.msra.mxu1 %v3130_v49 }
 0x537   :  { %1518 = vmatprep.subr.mxu0 %v3133_v50  ;;  %1589 = vmatprep.subr.mxu1 %v3136_v51 }
 0x538   :  { %1519 = vmatpush1.msra.mxu0 %v3139_v52  ;;  %1590 = vmatpush1.msra.mxu1 %v3142_v54 }
 0x539   :  { %1520 = vmatprep.subr.mxu0 %v3145_v55  ;;  %1591 = vmatprep.subr.mxu1 %v3148_v56 }
 0x53a   :  { %1521 = vmatpush1.msra.mxu0 %v3151_v57  ;;  %1592 = vmatpush1.msra.mxu1 %v3154_v58 }
 0x53b   :  { %1522 = vmatprep.subr.mxu0 %v3157_v59  ;;  %1593 = vmatprep.subr.mxu1 %v3160_v60 }
 0x53c   :  { %1523 = vmatpush1.msra.mxu0 %v3163_v61  ;;  %1594 = vmatpush1.msra.mxu1 %v3678_v41 }
 0x53d   :  { %1524 = vmatprep.subr.mxu0 %v3679_v25  ;;  %1595 = vmatprep.subr.mxu1 %v3680_v63 }
 0x53e   :  { %1525 = vmatpush1.msra.mxu0 %v3681_v1  ;;  %1596 = vmatpush1.msra.mxu1 %v3682_v3  ;;  %v3700_v3 = vld [vmem:[#allocation48_spill] sm:$0xff] }
 0x53f   :  { %1526 = vmatprep.subr.mxu0 %v3683_v23  ;;  %1597 = vmatprep.subr.mxu1 %v3684_v29 }
 0x540   :  { %1527 = vmatpush1.msra.mxu0 %v3685_v27  ;;  %1598 = vmatpush1.msra.mxu1 %v3686_v24  ;;  %v3696_v24 = vld [vmem:[#allocation11_spill] sm:$0xff] }
 0x541   :  { %1528 = vmatprep.subr.mxu0 %v3687_v20  ;;  %1599 = vmatprep.subr.mxu1 %v3688_v21  ;;  %v3697_v20 = vld [vmem:[#allocation12_spill] sm:$0xff] }
 0x542   :  { %1529 = vmatpush1.msra.mxu0 %v3689_v44  ;;  %1600 = vmatpush1.msra.mxu1 %v3690_v22  ;;  %v3698_v44 = vld [vmem:[#allocation47_spill] sm:$0xff] }
 0x543   :  { %1530 = vmatprep.subr.mxu0 %v3691_v28  ;;  %1601 = vmatprep.subr.mxu1 %v3692_v17  ;;  %v3699_v28 = vld [vmem:[#allocation49_spill] sm:$0xff] }
 0x544   :  { %1531 = vmatpush1.msra.mxu0 %v3693_v38  ;;  %1564 = vmatprep.mubr.f32.mxu0 %v3694_v40 }
 0x545   :  { %1602 = vmatpush1.msra.mxu1 %v3695_v2  ;;  %1635 = vmatprep.mubr.f32.mxu1 %v3694_v40  ;;  %v3701_v40 = vld [vmem:[#allocation50_spill] sm:$0xff] }
 0x546   :  { %1677 = vmatprep.subr.mxu0 %v3696_v24  ;;  %1748 = vmatprep.subr.mxu1 %v3697_v20 }
 0x5e5   :  { %v1389_v21 = vpop.f32.mrf.mxu0  ;;  %v1460_v38 = vpop.f32.mrf.mxu1 }
 0x5e6   :  { %v1465_v27 = vadd.f32 %v1389_v21, %v3698_v44  ;;  %v1467_v1 = vadd.f32 %v1460_v38, %v3700_v3 }
 0x5e7   :  { %v1391_v22 = vpop.f32.mrf.mxu0  ;;  %v1462_v2 = vpop.f32.mrf.mxu1 }
 0x5e8   :  { %v1995_v29 = vmul.f32 -1.442695, %v1465_v27  ;;  %v1466_v23 = vadd.f32 %v1391_v22, %v3699_v28  ;;  %v1997_v63 = vmul.f32 -1.442695, %v1467_v1  ;;  %v1468_v25 = vadd.f32 %v1462_v2, %v3701_v40  ;;  %v1862_v40 = vld [vmem:[%s3455_s4 + $0x78] sm:$0xff]  ;;  %v1861_v2 = vld [vmem:[%s3455_s4 + $0x70] sm:$0xff] }
 0x5ea   :  { %2143 = vpow2.f32 %v1995_v29  ;;  %v1996_v17 = vmul.f32 -1.442695, %v1466_v23 }
 0x5ec   :  { %2145 = vpow2.f32 %v1996_v17 }
 0x5ed   :  { %2147 = vpow2.f32 %v1997_v63 }
 0x5ee   :  { %2149 = vtanh.f32 %v1468_v25 }
 0x5f7   :  { %v2144_v24 = vpop.eup %2143 }
 0x5f8   :  { %v1478_v41 = vadd.f32 1.0, %v2144_v24  ;;  %v1860_v24 = vld [vmem:[%s3455_s4 + $0x68] sm:$0xff] }
 0x5f9   :  { %v2146_v20 = vpop.eup %2145 }
 0x5fa   :  { %2151 = vrcp.f32 %v1478_v41  ;;  %v1479_v21 = vadd.f32 1.0, %v2146_v20  ;;  %v2148_v27 = vpop.eup %2147  ;;  %v1859_v20 = vld [vmem:[%s3455_s4 + $0x60] sm:$0xff] }
 0x5fb   :  { %v2150_v44 = vpop.eup %2149  ;;  %v1480_v28 = vadd.f32 1.0, %v2148_v27  ;;  %v1857_v27 = vld [vmem:[%s3455_s4 + $0x50] sm:$0xff] }
 0x5fc   :  { %2153 = vrcp.f32 %v1479_v21  ;;  %v1858_v21 = vld [vmem:[%s3455_s4 + $0x58] sm:$0xff] }
 0x5fd   :  { %2155 = vrcp.f32 %v1480_v28  ;;  %v1852_v28 = vld [vmem:[%s3455_s4 + $0x28] sm:$0xff] }
 0x607   :  { %v2152_v29 = vpop.eup %2151 }
 0x608   :  { %v1489_v23 = vmul.f32 %v2152_v29, %v2150_v44  ;;  %v1856_v44 = vld [vmem:[%s3455_s4 + $0x48] sm:$0xff]  ;;  %v1855_v29 = vld [vmem:[%s3455_s4 + $0x40] sm:$0xff] }
 0x609   :  { %v2154_v22 = vpop.eup %2153 }
 0x60a   :  { %v1488_v3 = vmul.f32 %v2154_v22, %v3226_v14  ;;  %v2156_v1 = vpop.eup %2155  ;;  %v1853_v22 = vld [vmem:[%s3455_s4 + $0x30] sm:$0xff] }
 0x60c   :  { %v3300_v17 = vadd.f32 %v1489_v23, %v1488_v3  ;;  %v1854_v23 = vld [vmem:[%s3455_s4 + $0x38] sm:$0xff]  ;;  %v1851_v3 = vld [vmem:[%s3455_s4 + $0x20] sm:$0xff] }
 0x60e   :  { %2157 = vtanh.f32 %v3300_v17 }
 0x61b   :  { %v2158_v63 = vpop.eup %2157 }
 0x61c   :  { %v1492_v38 = vmul.f32 %v2158_v63, %v2156_v1  ;;  %v1849_v1 = vld [vmem:[%s3455_s4 + $0x10] sm:$0xff]  ;;  %v1848_v63 = vld [vmem:[%s3455_s4 + $0x8] sm:$0xff] }
 0x61e   :  { %1565 = vmatmul.mubr.f32.vlgmr.msra.gmra.mxu0 %v1492_v38  ;;  %1636 = vmatmul.mubr.f32.vlgmr.msra.gmra.mxu1 %v1492_v38  ;;  %v1847_v38 = vld [vmem:[%s3455_s4] sm:$0xff] }
 0x61f   :  { %1678 = vmatpush1.msra.mxu0 %v2957_v16  ;;  %1749 = vmatpush1.msra.mxu1 %v2960_v11  ;;  %v3702_v16 = vld [vmem:[#allocation10_spill] sm:$0xff]  ;;  %v3703_v11 = vld [vmem:[#allocation31_spill] sm:$0xff] }
 0x620   :  { %1679 = vmatprep.subr.mxu0 %v2963_v35  ;;  %1750 = vmatprep.subr.mxu1 %v2966_v9  ;;  %v3704_v35 = vld [vmem:[#allocation33_spill] sm:$0xff]  ;;  %v3705_v9 = vld [vmem:[#allocation32_spill] sm:$0xff] }
 0x621   :  { %1680 = vmatpush1.msra.mxu0 %v2969_v10  ;;  %1751 = vmatpush1.msra.mxu1 %v2972_v8  ;;  %v3706_v10 = vld [vmem:[#allocation34_spill] sm:$0xff] }
 0x622   :  { %1681 = vmatprep.subr.mxu0 %v2975_v5  ;;  %1752 = vmatprep.subr.mxu1 %v2978_v13  ;;  %v3707_v8 = vld [vmem:[#allocation14_spill] sm:$0xff]  ;;  %v3708_v5 = vld [vmem:[#allocation15_spill] sm:$0xff]  ;;  %v3709_v13 = vld [vmem:[#allocation16_spill] sm:$0xff] }
 0x623   :  { %1682 = vmatpush1.msra.mxu0 %v2981_v4  ;;  %1753 = vmatpush1.msra.mxu1 %v2984_v19  ;;  %v3710_v4 = vld [vmem:[#allocation17_spill] sm:$0xff]  ;;  %v3711_v19 = vld [vmem:[#allocation18_spill] sm:$0xff] }
 0x624   :  { %1683 = vmatprep.subr.mxu0 %v2987_v53  ;;  %1754 = vmatprep.subr.mxu1 %v2990_v26  ;;  %v3712_v53 = vld [vmem:[#allocation19_spill] sm:$0xff]  ;;  %v3713_v26 = vld [vmem:[#allocation20_spill] sm:$0xff] }
 0x625   :  { %1684 = vmatpush1.msra.mxu0 %v2993_v15  ;;  %1755 = vmatpush1.msra.mxu1 %v2996_v18  ;;  %v3714_v15 = vld [vmem:[#allocation21_spill] sm:$0xff]  ;;  %v3715_v18 = vld [vmem:[#allocation22_spill] sm:$0xff] }
 0x626   :  { %1685 = vmatprep.subr.mxu0 %v2999_v6  ;;  %1756 = vmatprep.subr.mxu1 %v3002_v42  ;;  %v3716_v6 = vld [vmem:[#allocation23_spill] sm:$0xff]  ;;  %v3717_v42 = vld [vmem:[#allocation24_spill] sm:$0xff] }
 0x627   :  { %1686 = vmatpush1.msra.mxu0 %v3655_v30  ;;  %1757 = vmatpush1.msra.mxu1 %v3656_v31  ;;  %v3721_v31 = vld [vmem:[#allocation53_spill] sm:$0xff] }
 0x628   :  { %1687 = vmatprep.subr.mxu0 %v3011_v46  ;;  %1758 = vmatprep.subr.mxu1 %v3014_v62  ;;  %v3720_v62 = vld [vmem:[#allocation51_spill] sm:$0xff] }
 0x629   :  { %1688 = vmatpush1.msra.mxu0 %v3017_v0  ;;  %1759 = vmatpush1.msra.mxu1 %v3020_v12 }
 0x62a   :  { %1689 = vmatprep.subr.mxu0 %v3023_v43  ;;  %1760 = vmatprep.subr.mxu1 %v3026_v45  ;;  %v3718_v43 = vmov 0.0   ;;  %v3719_v45 = vld [vmem:[#allocation25_spill] sm:$0xff] }
 0x62b   :  { %1690 = vmatpush1.msra.mxu0 %v3103_v32  ;;  %1761 = vmatpush1.msra.mxu1 %v3106_v33 }
 0x62c   :  { %1691 = vmatprep.subr.mxu0 %v3109_v34  ;;  %1762 = vmatprep.subr.mxu1 %v3112_v36  ;;  %v3722_v36 = vld [vmem:[#allocation52_spill] sm:$0xff] }
 0x62d   :  { %1692 = vmatpush1.msra.mxu0 %v3115_v37  ;;  %1763 = vmatpush1.msra.mxu1 %v3118_v39 }
 0x62e   :  { %1693 = vmatprep.subr.mxu0 %v3121_v7  ;;  %1764 = vmatprep.subr.mxu1 %v3124_v47  ;;  %v3723_v47 = vld [vmem:[#allocation54_spill] sm:$0xff] }
 0x62f   :  { %1694 = vmatpush1.msra.mxu0 %v3127_v48  ;;  %1765 = vmatpush1.msra.mxu1 %v3130_v49 }
 0x630   :  { %1695 = vmatprep.subr.mxu0 %v3133_v50  ;;  %1766 = vmatprep.subr.mxu1 %v3136_v51 }
 0x631   :  { %1696 = vmatpush1.msra.mxu0 %v3139_v52  ;;  %1767 = vmatpush1.msra.mxu1 %v3142_v54 }
 0x632   :  { %1697 = vmatprep.subr.mxu0 %v3145_v55  ;;  %1768 = vmatprep.subr.mxu1 %v3148_v56 }
 0x633   :  { %1698 = vmatpush1.msra.mxu0 %v3151_v57  ;;  %1769 = vmatpush1.msra.mxu1 %v3154_v58 }
 0x634   :  { %1699 = vmatprep.subr.mxu0 %v3157_v59  ;;  %1770 = vmatprep.subr.mxu1 %v3160_v60 }
 0x635   :  { %1700 = vmatpush1.msra.mxu0 %v3163_v61  ;;  %1771 = vmatpush1.msra.mxu1 %v3702_v16 }
 0x636   :  { %1701 = vmatprep.subr.mxu0 %v3703_v11  ;;  %1772 = vmatprep.subr.mxu1 %v3704_v35  ;;  %v3724_v11 = vld [vmem:[#allocation55_spill] sm:$0xff] }
 0x637   :  { %1702 = vmatpush1.msra.mxu0 %v3705_v9  ;;  %1773 = vmatpush1.msra.mxu1 %v3706_v10 }
 0x638   :  { %1703 = vmatprep.subr.mxu0 %v3707_v8  ;;  %1774 = vmatprep.subr.mxu1 %v3708_v5  ;;  %v3725_v8 = vld [vmem:[#allocation57_spill] sm:$0xff] }
 0x639   :  { %1704 = vmatpush1.msra.mxu0 %v3709_v13  ;;  %1775 = vmatpush1.msra.mxu1 %v3710_v4 }
 0x63a   :  { %1705 = vmatprep.subr.mxu0 %v3711_v19  ;;  %1776 = vmatprep.subr.mxu1 %v3712_v53  ;;  %v3726_v19 = vld [vmem:[#allocation56_spill] sm:$0xff] }
 0x63b   :  { %1706 = vmatpush1.msra.mxu0 %v3713_v26  ;;  %1777 = vmatpush1.msra.mxu1 %v3714_v15 }
 0x63c   :  { %1707 = vmatprep.subr.mxu0 %v3715_v18  ;;  %1778 = vmatprep.subr.mxu1 %v3716_v6  ;;  %v3727_v18 = vld [vmem:[#allocation58_spill] sm:$0xff] }
 0x63d   :  { %1708 = vmatpush1.msra.mxu0 %v3717_v42  ;;  %1741 = vmatprep.mubr.f32.mxu0 %v3718_v43 }
 0x63e   :  { %1779 = vmatpush1.msra.mxu1 %v3719_v45  ;;  %1812 = vmatprep.mubr.f32.mxu1 %v3718_v43 }
 0x63f   :  { %2022 = vmatprep.subr.mxu0 %v3718_v43 }
 0x6de   :  { %v1566_v46 = vpop.f32.mrf.mxu0  ;;  %v1637_v34 = vpop.f32.mrf.mxu1 }
 0x6df   :  { %v1642_v0 = vadd.f32 %v1566_v46, %v3720_v62  ;;  %v1644_v37 = vadd.f32 %v1637_v34, %v3722_v36 }
 0x6e0   :  { %v1568_v12 = vpop.f32.mrf.mxu0  ;;  %v1639_v39 = vpop.f32.mrf.mxu1 }
 0x6e1   :  { %v1998_v30 = vmul.f32 -1.442695, %v1642_v0  ;;  %v1643_v32 = vadd.f32 %v1568_v12, %v3721_v31  ;;  %v2000_v7 = vmul.f32 -1.442695, %v1644_v37  ;;  %v1645_v48 = vadd.f32 %v1639_v39, %v3723_v47 }
 0x6e3   :  { %2159 = vpow2.f32 %v1998_v30  ;;  %v1999_v33 = vmul.f32 -1.442695, %v1643_v32 }
 0x6e5   :  { %2161 = vpow2.f32 %v1999_v33 }
 0x6e6   :  { %2163 = vpow2.f32 %v2000_v7  ;;  %v2004_v7 = vld [vmem:[%s3456_s5] ss:$0 sm:$0xff] }
 0x6e7   :  { %2165 = vtanh.f32 %v1645_v48 }
 0x6f0   :  { %v2160_v49 = vpop.eup %2159 }
 0x6f1   :  { %v1655_v50 = vadd.f32 1.0, %v2160_v49 }
 0x6f2   :  { %v2162_v51 = vpop.eup %2161 }
 0x6f3   :  { %2167 = vrcp.f32 %v1655_v50  ;;  %v1656_v52 = vadd.f32 1.0, %v2162_v51  ;;  %v2164_v54 = vpop.eup %2163 }
 0x6f4   :  { %v2166_v55 = vpop.eup %2165  ;;  %v1657_v59 = vadd.f32 1.0, %v2164_v54 }
 0x6f5   :  { %2169 = vrcp.f32 %v1656_v52 }
 0x6f6   :  { %2171 = vrcp.f32 %v1657_v59 }
 0x700   :  { %v2168_v56 = vpop.eup %2167 }
 0x701   :  { %v1666_v57 = vmul.f32 %v2168_v56, %v2166_v55 }
 0x702   :  { %v2170_v58 = vpop.eup %2169 }
 0x703   :  { %v1665_v60 = vmul.f32 %v2170_v58, %v3300_v17  ;;  %v2172_v14 = vpop.eup %2171  ;;  %v1850_v17 = vld [vmem:[%s3455_s4 + $0x18] sm:$0xff] }
 0x705   :  { %v3373_v61 = vadd.f32 %v1666_v57, %v1665_v60 }
 0x707   :  { %2173 = vtanh.f32 %v3373_v61 }
 0x714   :  { %v2174_v41 = vpop.eup %2173 }
 0x715   :  { %v1669_v25 = vmul.f32 %v2174_v41, %v2172_v14 }
 0x717   :  { %1742 = vmatmul.mubr.f32.vlgmr.msra.gmra.mxu0 %v1669_v25  ;;  %1813 = vmatmul.mubr.f32.vlgmr.msra.gmra.mxu1 %v1669_v25 }
 0x718   :  { %2023 = vmatpush3.msra.mxu0 %v1862_v40  ;;  %2054 = vmatprep.mubr.msk.f32.mxu0 %vm2303_vm1, %v3718_v43 }
 0x719   :  { %2024 = vmatprep.subr.mxu0 %v3718_v43 }
 0x71a   :  { %2025 = vmatpush3.msra.mxu0 %v1861_v2 }
 0x71b   :  { %2026 = vmatprep.subr.mxu0 %v3718_v43 }
 0x71c   :  { %2027 = vmatpush3.msra.mxu0 %v1860_v24 }
 0x71d   :  { %2028 = vmatprep.subr.mxu0 %v3718_v43 }
 0x71e   :  { %2029 = vmatpush3.msra.mxu0 %v1859_v20 }
 0x71f   :  { %2030 = vmatprep.subr.mxu0 %v3718_v43 }
 0x720   :  { %2031 = vmatpush3.msra.mxu0 %v1858_v21 }
 0x721   :  { %2032 = vmatprep.subr.mxu0 %v3718_v43 }
 0x722   :  { %2033 = vmatpush3.msra.mxu0 %v1857_v27 }
 0x723   :  { %2034 = vmatprep.subr.mxu0 %v3718_v43 }
 0x724   :  { %2035 = vmatpush3.msra.mxu0 %v1856_v44 }
 0x725   :  { %2036 = vmatprep.subr.mxu0 %v3718_v43 }
 0x726   :  { %2037 = vmatpush3.msra.mxu0 %v1855_v29 }
 0x727   :  { %2038 = vmatprep.subr.mxu0 %v3718_v43 }
 0x728   :  { %2039 = vmatpush3.msra.mxu0 %v1854_v23 }
 0x729   :  { %2040 = vmatprep.subr.mxu0 %v3718_v43 }
 0x72a   :  { %2041 = vmatpush3.msra.mxu0 %v1853_v22 }
 0x72b   :  { %2042 = vmatprep.subr.mxu0 %v3718_v43 }
 0x72c   :  { %2043 = vmatpush3.msra.mxu0 %v1852_v28 }
 0x72d   :  { %2044 = vmatprep.subr.mxu0 %v3718_v43 }
 0x72e   :  { %2045 = vmatpush3.msra.mxu0 %v1851_v3 }
 0x72f   :  { %2046 = vmatprep.subr.mxu0 %v3718_v43 }
 0x730   :  { %2047 = vmatpush3.msra.mxu0 %v1850_v17 }
 0x731   :  { %2048 = vmatprep.subr.mxu0 %v3718_v43 }
 0x732   :  { %2049 = vmatpush3.msra.mxu0 %v1849_v1 }
 0x733   :  { %2050 = vmatprep.subr.mxu0 %v3718_v43 }
 0x734   :  { %2051 = vmatpush3.msra.mxu0 %v1848_v63 }
 0x735   :  { %2052 = vmatprep.subr.mxu0 %v3718_v43 }
 0x736   :  { %2053 = vmatpush3.msra.mxu0 %v1847_v38 }
 0x7d7   :  { %v1743_v16 = vpop.f32.mrf.mxu0  ;;  %v1814_v4 = vpop.f32.mrf.mxu1 }
 0x7d8   :  { %v1819_v35 = vadd.f32 %v1743_v16, %v3724_v11  ;;  %v1821_v53 = vadd.f32 %v1814_v4, %v3726_v19 }
 0x7d9   :  { %v1745_v9 = vpop.f32.mrf.mxu0  ;;  %v1816_v26 = vpop.f32.mrf.mxu1 }
 0x7da   :  { %v2001_v10 = vmul.f32 -1.442695, %v1819_v35  ;;  %v1820_v5 = vadd.f32 %v1745_v9, %v3725_v8  ;;  %v2003_v15 = vmul.f32 -1.442695, %v1821_v53  ;;  %v1822_v6 = vadd.f32 %v1816_v26, %v3727_v18 }
 0x7dc   :  { %2175 = vpow2.f32 %v2001_v10  ;;  %v2002_v13 = vmul.f32 -1.442695, %v1820_v5 }
 0x7de   :  { %2177 = vpow2.f32 %v2002_v13 }
 0x7df   :  { %2179 = vpow2.f32 %v2003_v15 }
 0x7e0   :  { %2181 = vtanh.f32 %v1822_v6 }
 0x7e9   :  { %v2176_v42 = vpop.eup %2175 }
 0x7ea   :  { %v1832_v43 = vadd.f32 1.0, %v2176_v42 }
 0x7eb   :  { %v2178_v45 = vpop.eup %2177 }
 0x7ec   :  { %2183 = vrcp.f32 %v1832_v43  ;;  %v1833_v46 = vadd.f32 1.0, %v2178_v45  ;;  %v2180_v62 = vpop.eup %2179 }
 0x7ed   :  { %v2182_v0 = vpop.eup %2181  ;;  %v1834_v32 = vadd.f32 1.0, %v2180_v62 }
 0x7ee   :  { %2185 = vrcp.f32 %v1833_v46 }
 0x7ef   :  { %2187 = vrcp.f32 %v1834_v32 }
 0x7f9   :  { %v2184_v12 = vpop.eup %2183 }
 0x7fa   :  { %v1843_v30 = vmul.f32 %v2184_v12, %v2182_v0 }
 0x7fb   :  { %v2186_v31 = vpop.eup %2185 }
 0x7fc   :  { %v1842_v33 = vmul.f32 %v2186_v31, %v3373_v61  ;;  %v2188_v36 = vpop.eup %2187 }
 0x7fe   :  { %v1844_v34 = vadd.f32 %v1843_v30, %v1842_v33 }
 0x800   :  { %2189 = vtanh.f32 %v1844_v34 }
 0x80d   :  { %v2190_v37 = vpop.eup %2189 }
 0x80e   :  { %v1846_v39 = vmul.f32 %v2190_v37, %v2188_v36 }
 0x810   :  { %2055 = vmatmul.mubr.f32.vlgmr.msra.gmra.mxu0 %v1846_v39 }
 0x8d0   :  { %v1936_v47 = vpop.f32.mrf.mxu0 }
 0x8d1   :  { %v1937_v48 = vadd.f32 %v2004_v7, %v1936_v47 }
 0x8d2   :  { %v2056_v49 = vpop.f32.mrf.mxu0 }
 0x8d3   :  { %1941 = vst.msk [vmem:[#allocation6] sm:$0xff] %vm1940_vm2, %v1937_v48 }
 0x8d4   :  { %2286 = shalt.err (!%p2283_p9)
}
 0x8d5   :  { %1951 = dma.vmem_to_hbm [thread:$0]  %s1949_s7, 128, %s3457_s6, [#allocation5]  }
 0x8d6   :  { %2297 = dma.done.wait [#allocation5], 128  }
 0x8d7   :  { %2298 = vsyncadd [#allocation5], 4294967168 }
 0x8d8   :  { %1955 = vsyncpa [#allocation4], 1 }
 0x8d9   :  { %1956 = vsyncpa [#allocation5], 1 }

</bundles_post_ra>
